<compile_context>
chip_gen: v6e
topology: v6e:2x2x1
jax: 0.10.0
libtpu: 0.0.40
codegen_flags: <defaults>
</compile_context>

<pallas_src>
import functools

import jax
import jax.numpy as jnp
from jax.experimental import pallas as pl
from jax.experimental.pallas import tpu as pltpu

# ----------------------------- module constants -----------------------------
AREA_ID_EMBED_DIM = 32
AREA_REGION_ID_EMBED_DIM = 8
COMPANY_ID_EMBED_DIM = 16
COMPENSATION_CURRENCY_CODE_EMBED_DIM = 4
DESCRIPTION_EMBED_DIM = 312
EMBED_DIM = 256
EMPLOYMENT_EMBED_DIM = 4
NAME_EMBED_DIM = 16
N_AREA_ID = 7015
N_AREA_REGION_ID = 107
N_COMPANY_ID = 278913
N_COMPENSATION_CURRENCY_CODE = 11
N_EMPLOYMENT = 6
N_NAME = 18060
N_WORK_EXPERIENCE = 5
N_WORK_SCHEDULE = 6
VACANCY_ID_EMBED_DIM = 0
WORK_EXPERIENCE_EMBED_DIM = 4
WORK_SCHEDULE_EMBED_DIM = 4

FC_IN = (VACANCY_ID_EMBED_DIM + COMPANY_ID_EMBED_DIM + AREA_ID_EMBED_DIM
         + AREA_REGION_ID_EMBED_DIM + EMPLOYMENT_EMBED_DIM
         + WORK_SCHEDULE_EMBED_DIM + WORK_EXPERIENCE_EMBED_DIM
         + COMPENSATION_CURRENCY_CODE_EMBED_DIM + NAME_EMBED_DIM
         + DESCRIPTION_EMBED_DIM)          # == 400
FC_IN_PAD = 512                            # lane/K-aligned feature width
N_HIDDEN_W = 7                             # stacked (256,256) hidden weights
N_OUT_W = 4                                # fc_out split into 4 x (256,256)
N_BIAS_ROWS = 16                           # 9 real bias rows, padded to 16


def _round_up(n, m):
    return ((n + m - 1) // m) * m


def _default_bf16_epilogue():
    """bf16 bias-add/ReLU only where a bf16 VALU exists (v6e/v7x)."""
    try:
        kind = jax.devices()[0].device_kind.lower()
    except Exception:  # pragma: no cover - conservative fallback
        return False
    return ("v6" in kind) or ("v7" in kind)


# --------------------------------- kernel -----------------------------------
def _mlp_kernel(feat_ref, w1a_ref, wmid_ref, wo_ref, bias_ref, out_ref, *,
                act_dtype):
    """feat (TB,512) bf16; w1a (512,256) bf16; wmid (7,256,256) bf16;
    wo (4,256,256) bf16; bias (16,256) f32; out (TB,256) f32.
    act_dtype: dtype for the bias-add/ReLU epilogue (f32 on v5e, bf16 on
    v6e/v7x)."""

    # One-time (16,256) cast; no-op when act_dtype == f32.
    bias = bias_ref[...].astype(act_dtype)

    def layer(h_bf16, w_bf16, brow):
        # bf16 x bf16 MXU matmul with f32 accumulation, then epilogue in
        # act_dtype.  Exactly one cast to bf16 per layer; the result is reused
        # both as the next layer's LHS and as the fc_out split-sum operand.
        acc = jnp.dot(h_bf16, w_bf16, preferred_element_type=jnp.float32)
        a = jnp.maximum(acc.astype(act_dtype) + bias[brow:brow + 1, :], 0.0)
        return a.astype(jnp.bfloat16)

    feat = feat_ref[...]                                   # (TB, 512) bf16
    x = layer(feat, w1a_ref[...], 0)                       # fc, layer a
    x = layer(x, wmid_ref[0], 1)                           # fc, layer b
    y = layer(x, wmid_ref[1], 2)                           # fc_2
    y = layer(y, wmid_ref[2], 3)
    z = layer(y, wmid_ref[3], 4)                           # fc_3
    z = layer(z, wmid_ref[4], 5)
    p = layer(z, wmid_ref[5], 6)                           # fc_4
    p = layer(p, wmid_ref[6], 7)

    # fc_out(concat([x, y, z, p], dim=1)) as a split-sum: no (TB,1024) concat
    # copy; four K=256 MXU passes accumulated into one f32 tile (in-place MRB
    # accumulation on v7x).  fc_out bias stays in f32 (output is f32).
    acc = jnp.dot(x, wo_ref[0], preferred_element_type=jnp.float32)
    acc = acc + jnp.dot(y, wo_ref[1], preferred_element_type=jnp.float32)
    acc = acc + jnp.dot(z, wo_ref[2], preferred_element_type=jnp.float32)
    acc = acc + jnp.dot(p, wo_ref[3], preferred_element_type=jnp.float32)
    out_ref[...] = (acc + bias_ref[8:9, :]).astype(out_ref.dtype)


def mlp_cascade_pallas(feat, packed, tb=1024, bf16_epilogue=None):
    """feat: (B, FC_IN_PAD) bfloat16 (already padded 400->512 by
    gather_features); packed: dict from pack_mlp_params."""
    B, F = feat.shape
    assert F == FC_IN_PAD, f"expected padded {FC_IN_PAD}-wide features, got {F}"
    feat = feat.astype(jnp.bfloat16)   # no-op on the gather_features path

    if bf16_epilogue is None:
        bf16_epilogue = _default_bf16_epilogue()
    act_dtype = jnp.bfloat16 if bf16_epilogue else jnp.float32

    # Cap the tile so the grid has >=2 steps whenever the batch allows it
    # (both v7x TensorCores get work; harmless on single-TC v5e/v6e), with a
    # 16-row minimum (bf16 sublane packing).
    # NOTE: production batches should use tb >= 256 (ideally 512-2048); tiny
    # tiles (e.g. tb=16) are for correctness tests only and leave the MXU
    # mostly idle.
    half = _round_up(max(1, -(-B // 2)), 16)
    tb_eff = max(16, min(_round_up(tb, 16), half))
    b_pad = _round_up(B, tb_eff)
    if b_pad != B:
        feat = jnp.pad(feat, ((0, b_pad - B), (0, 0)))

    kernel = functools.partial(_mlp_kernel, act_dtype=act_dtype)
    # Weights/biases use a constant index_map (fetched once, VMEM-resident);
    # single-buffer them so the pipeline does not duplicate ~1.7 MiB of VMEM.
    resident = dict(pipeline_mode=pl.Buffered(1))

    out = pl.pallas_call(
        kernel,
        out_shape=jax.ShapeDtypeStruct((b_pad, EMBED_DIM), jnp.float32),
        grid=(b_pad // tb_eff,),
        in_specs=[
            # batch-blocked activation input
            pl.BlockSpec((tb_eff, FC_IN_PAD), lambda i: (i, 0)),
            # VMEM-resident weights / biases
            pl.BlockSpec((FC_IN_PAD, EMBED_DIM), lambda i: (0, 0), **resident),
            pl.BlockSpec((N_HIDDEN_W, EMBED_DIM, EMBED_DIM),
                         lambda i: (0, 0, 0), **resident),
            pl.BlockSpec((N_OUT_W, EMBED_DIM, EMBED_DIM),
                         lambda i: (0, 0, 0), **resident),
            pl.BlockSpec((N_BIAS_ROWS, EMBED_DIM), lambda i: (0, 0), **resident),
        ],
        out_specs=pl.BlockSpec((tb_eff, EMBED_DIM), lambda i: (i, 0)),
        compiler_params=pltpu.CompilerParams(
            dimension_semantics=("parallel",),      # megacore batch sharding
            vmem_limit_bytes=48 * 1024 * 1024),     # headroom for tb up to 2048
    )(feat, packed["w1a"], packed["wmid"], packed["wo"], packed["bias"])
    return out[:B]


# ------------------------------ parameter init -------------------------------
def _linear_init(key, fan_in, fan_out):
    # PyTorch nn.Linear default: U(-1/sqrt(fan_in), 1/sqrt(fan_in)).
    kw, kb = jax.random.split(key)
    bound = 1.0 / jnp.sqrt(float(fan_in))
    w = jax.random.uniform(kw, (fan_in, fan_out), jnp.float32, -bound, bound)
    b = jax.random.uniform(kb, (1, fan_out), jnp.float32, -bound, bound)
    return w, b


def pack_mlp_params(mlp):
    """Consolidate the 18 f32 params into 5 kernel operands (weights in bf16)."""
    (w1a, b1a, w1b, b1b, w2a, b2a, w2b, b2b, w3a, b3a, w3b, b3b,
     w4a, b4a, w4b, b4b, wo, bo) = mlp
    # Pad first-layer weight rows 400 -> 512 with zeros (numerically inert).
    w1a_p = jnp.zeros((FC_IN_PAD, EMBED_DIM), jnp.float32).at[:FC_IN].set(w1a)
    wmid = jnp.stack([w1b, w2a, w2b, w3a, w3b, w4a, w4b], axis=0)
    # fc_out weight split along K into 4 x (256,256) for the split-sum kernel.
    wo_split = wo.reshape(N_OUT_W, EMBED_DIM, EMBED_DIM)
    bias = jnp.concatenate(
        [b1a, b1b, b2a, b2b, b3a, b3b, b4a, b4b, bo,
         jnp.zeros((N_BIAS_ROWS - 9, EMBED_DIM), jnp.float32)], axis=0)
    return {
        "w1a": w1a_p.astype(jnp.bfloat16),
        "wmid": wmid.astype(jnp.bfloat16),
        "wo": wo_split.astype(jnp.bfloat16),
        "bias": bias,                       # biases stay f32 (cast in-kernel)
    }


def init_params(key):
    keys = jax.random.split(key, 20)
    params = {}
    # Embedding tables (PyTorch default: N(0, 1)).
    params["company_id"] = jax.random.normal(keys[0], (N_COMPANY_ID, COMPANY_ID_EMBED_DIM), jnp.float32)
    params["area_id"] = jax.random.normal(keys[1], (N_AREA_ID, AREA_ID_EMBED_DIM), jnp.float32)
    params["area_region_id"] = jax.random.normal(keys[2], (N_AREA_REGION_ID, AREA_REGION_ID_EMBED_DIM), jnp.float32)
    params["employment"] = jax.random.normal(keys[3], (N_EMPLOYMENT, EMPLOYMENT_EMBED_DIM), jnp.float32)
    params["work_schedule"] = jax.random.normal(keys[4], (N_WORK_SCHEDULE, WORK_SCHEDULE_EMBED_DIM), jnp.float32)
    params["work_experience"] = jax.random.normal(keys[5], (N_WORK_EXPERIENCE, WORK_EXPERIENCE_EMBED_DIM), jnp.float32)
    params["compensation_currency_code"] = jax.random.normal(
        keys[6], (N_COMPENSATION_CURRENCY_CODE, COMPENSATION_CURRENCY_CODE_EMBED_DIM), jnp.float32)
    params["name"] = jax.random.normal(keys[7], (N_NAME, NAME_EMBED_DIM), jnp.float32)

    # fc (400 -> 256 -> 256), fc_2/3/4 (256 -> 256 -> 256), fc_out (1024 -> 256)
    w1a, b1a = _linear_init(keys[8], FC_IN, EMBED_DIM)
    w1b, b1b = _linear_init(keys[9], EMBED_DIM, EMBED_DIM)
    w2a, b2a = _linear_init(keys[10], EMBED_DIM, EMBED_DIM)
    w2b, b2b = _linear_init(keys[11], EMBED_DIM, EMBED_DIM)
    w3a, b3a = _linear_init(keys[12], EMBED_DIM, EMBED_DIM)
    w3b, b3b = _linear_init(keys[13], EMBED_DIM, EMBED_DIM)
    w4a, b4a = _linear_init(keys[14], EMBED_DIM, EMBED_DIM)
    w4b, b4b = _linear_init(keys[15], EMBED_DIM, EMBED_DIM)
    wo, bo = _linear_init(keys[16], 4 * EMBED_DIM, EMBED_DIM)

    params["mlp"] = [w1a, b1a, w1b, b1b, w2a, b2a, w2b, b2b,
                     w3a, b3a, w3b, b3b, w4a, b4a, w4b, b4b, wo, bo]
    params["mlp_packed"] = pack_mlp_params(params["mlp"])
    return params


# ----------------------------- full forward ----------------------------------
def gather_features(x, desc, params):
    """Embedding lookups + concat; emits the kernel's (B, 512) bf16 layout
    directly (pad columns 400->512 fused here, no extra HBM round-trip)."""
    # TODO(synk): fold these gathers into the kernel via PrefetchScalarGridSpec
    # (indices as scalar-prefetch + manual DMA row-gather) so the feature
    # matrix never round-trips through HBM.
    # EmbeddingBag(mode='mean') over a bag of exactly one index == plain lookup.
    comp = jnp.take(params["company_id"], desc["company_id"][x], axis=0)
    area = jnp.take(params["area_id"], desc["area_id"][x], axis=0)
    region = jnp.take(params["area_region_id"], desc["area_region_id"][x], axis=0)
    sched = jnp.take(params["work_schedule"], desc["work_schedule"][x], axis=0)
    empl = jnp.take(params["employment"], desc["employment"][x], axis=0)
    wexp = jnp.take(params["work_experience"], desc["work_experience"][x], axis=0)
    curr = jnp.take(params["compensation_currency_code"],
                    desc["compensation_currency_code"][x], axis=0)
    name = jnp.take(params["name"], desc["name"][x], axis=0)
    text = desc["text"][x]
    pieces = [p.astype(jnp.bfloat16)
              for p in (comp, area, region, sched, empl, wexp, curr, name, text)]
    pad = jnp.zeros((x.shape[0], FC_IN_PAD - FC_IN), jnp.bfloat16)
    return jnp.concatenate(pieces + [pad], axis=1)         # (B, 512) bf16


def embed_single_vac_forward(x, desc, params, tb=1024, bf16_epilogue=None):
    feat = gather_features(x, desc, params)
    return mlp_cascade_pallas(feat, params["mlp_packed"], tb=tb,
                              bf16_epilogue=bf16_epilogue)


def mlp_cascade_reference(feat, packed, bf16_epilogue=None):
    """Pure-JAX reference mirroring the kernel's bf16-operand / f32-accumulate
    math and its epilogue dtype."""
    if bf16_epilogue is None:
        bf16_epilogue = _default_bf16_epilogue()
    act_dtype = jnp.bfloat16 if bf16_epilogue else jnp.float32
    w1a, wmid, wo, bias_f32 = packed["w1a"], packed["wmid"], packed["wo"], packed["bias"]
    bias = bias_f32.astype(act_dtype)
    f = feat.astype(jnp.bfloat16)

    def layer(h, w, brow):
        acc = jnp.dot(h, w, preferred_element_type=jnp.float32)
        a = jnp.maximum(acc.astype(act_dtype) + bias[brow:brow + 1, :], 0.0)
        return a.astype(jnp.bfloat16)

    x = layer(f, w1a, 0); x = layer(x, wmid[0], 1)
    y = layer(x, wmid[1], 2); y = layer(y, wmid[2], 3)
    z = layer(y, wmid[3], 4); z = layer(z, wmid[4], 5)
    p = layer(z, wmid[5], 6); p = layer(p, wmid[6], 7)
    out = (jnp.dot(x, wo[0], preferred_element_type=jnp.float32)
           + jnp.dot(y, wo[1], preferred_element_type=jnp.float32)
           + jnp.dot(z, wo[2], preferred_element_type=jnp.float32)
           + jnp.dot(p, wo[3], preferred_element_type=jnp.float32))
    return out + bias_f32[8:9, :]


def embed_single_vac_reference(x, desc, params, bf16_epilogue=None):
    feat = gather_features(x, desc, params)
    return mlp_cascade_reference(feat, params["mlp_packed"],
                                 bf16_epilogue=bf16_epilogue)


# ----------------------------------- main ------------------------------------
if __name__ == "__main__":
    key = jax.random.PRNGKey(0)
    kp, kd, kx, kx2 = jax.random.split(key, 4)
    params = init_params(kp)

    # Synthetic "description" dataset of N_VAC vacancies.
    N_VAC = 32
    dkeys = jax.random.split(kd, 9)
    desc = {
        "company_id": jax.random.randint(dkeys[0], (N_VAC,), 0, N_COMPANY_ID),
        "area_id": jax.random.randint(dkeys[1], (N_VAC,), 0, N_AREA_ID),
        "area_region_id": jax.random.randint(dkeys[2], (N_VAC,), 0, N_AREA_REGION_ID),
        "work_schedule": jax.random.randint(dkeys[3], (N_VAC,), 0, N_WORK_SCHEDULE),
        "employment": jax.random.randint(dkeys[4], (N_VAC,), 0, N_EMPLOYMENT),
        "work_experience": jax.random.randint(dkeys[5], (N_VAC,), 0, N_WORK_EXPERIENCE),
        "compensation_currency_code": jax.random.randint(
            dkeys[6], (N_VAC,), 0, N_COMPENSATION_CURRENCY_CODE),
        "name": jax.random.randint(dkeys[7], (N_VAC,), 0, N_NAME),
        "text": jax.random.normal(dkeys[8], (N_VAC, DESCRIPTION_EMBED_DIM), jnp.float32),
    }

    # Check 1: small batch, default tile (single grid step).
    B = 8
    x = jax.random.randint(kx, (B,), 0, N_VAC)
    out = jax.block_until_ready(embed_single_vac_forward(x, desc, params))
    assert out.shape == (B, EMBED_DIM) and out.dtype == jnp.float32
    ref = jax.block_until_ready(embed_single_vac_reference(x, desc, params))
    assert jnp.allclose(out, ref, atol=5e-3, rtol=5e-3), "mismatch vs reference (B=8)"

    # Check 2: multi-step batch-tiled grid with a partially-filled last tile.
    # (tb=16 is correctness-only; production should use tb >= 256.)
    B2 = 40
    x2 = jax.random.randint(kx2, (B2,), 0, N_VAC)
    out2 = jax.block_until_ready(embed_single_vac_forward(x2, desc, params, tb=16))
    ref2 = jax.block_until_ready(embed_single_vac_reference(x2, desc, params))
    assert out2.shape == (B2, EMBED_DIM)
    assert jnp.allclose(out2, ref2, atol=5e-3, rtol=5e-3), "mismatch vs reference (B=40, tiled)"

    print("KERNEL_OK")
</pallas_src>

<mosaic_0001>
module attributes {stable_mosaic.version = 11 : i64} {
  func.func @_mlp_kernel(%arg0: i32, %arg1: memref<16x512xbf16, #tpu.memory_space<vmem>>, %arg2: memref<512x256xbf16, #tpu.memory_space<vmem>>, %arg3: memref<7x256x256xbf16, #tpu.memory_space<vmem>>, %arg4: memref<4x256x256xbf16, #tpu.memory_space<vmem>>, %arg5: memref<16x256xf32, #tpu.memory_space<vmem>>, %arg6: memref<16x256xf32, #tpu.memory_space<vmem>>) attributes {dimension_semantics = [#tpu.dimension_semantics<parallel>], iteration_bounds = array<i64: 1>, scalar_prefetch = 0 : i64, scratch_operands = 0 : i64, tpu.core_type = #tpu.core_type<tc>, window_params = [{transform_indices = @transform_0, window_bounds = array<i64: 16, 512>}, {pipeline_mode = #tpu.pipeline_mode<synchronous>, transform_indices = @transform_1, window_bounds = array<i64: 512, 256>}, {pipeline_mode = #tpu.pipeline_mode<synchronous>, transform_indices = @transform_2, window_bounds = array<i64: 7, 256, 256>}, {pipeline_mode = #tpu.pipeline_mode<synchronous>, transform_indices = @transform_3, window_bounds = array<i64: 4, 256, 256>}, {pipeline_mode = #tpu.pipeline_mode<synchronous>, transform_indices = @transform_4, window_bounds = array<i64: 16, 256>}, {transform_indices = @transform_5, window_bounds = array<i64: 16, 256>}]} {
    %c0 = arith.constant 0 : index
    %c0_0 = arith.constant 0 : index
    %0 = vector.load %arg5[%c0, %c0_0] : memref<16x256xf32, #tpu.memory_space<vmem>>, vector<16x256xf32>
    %c0_1 = arith.constant 0 : index
    %c0_2 = arith.constant 0 : index
    %1 = vector.load %arg1[%c0_1, %c0_2] : memref<16x512xbf16, #tpu.memory_space<vmem>>, vector<16x512xbf16>
    %c0_3 = arith.constant 0 : index
    %c0_4 = arith.constant 0 : index
    %2 = vector.load %arg2[%c0_3, %c0_4] : memref<512x256xbf16, #tpu.memory_space<vmem>>, vector<512x256xbf16>
    %cst = arith.constant dense<0.000000e+00> : vector<16x256xf32>
    %3 = tpu.matmul %1, %2, %cst {dimension_numbers = #tpu.dot_dimension_numbers<[1], [0], [0], [1], [0, 0, 1, 1], [], []>} : vector<16x512xbf16>, vector<512x256xbf16>, vector<16x256xf32> -> vector<16x256xf32>
    %4 = vector.extract_strided_slice %0 {offsets = [0, 0], sizes = [1, 256], strides = [1, 1]} : vector<16x256xf32> to vector<1x256xf32>
    %5 = vector.broadcast %4 : vector<1x256xf32> to vector<16x256xf32>
    %6 = arith.addf %3, %5 : vector<16x256xf32>
    %cst_5 = arith.constant 0.000000e+00 : f32
    %7 = vector.broadcast %cst_5 : f32 to vector<16x256xf32>
    %8 = arith.maximumf %6, %7 : vector<16x256xf32>
    %9 = arith.truncf %8 : vector<16x256xf32> to vector<16x256xbf16>
    %c0_6 = arith.constant 0 : index
    %c0_7 = arith.constant 0 : index
    %c0_8 = arith.constant 0 : index
    %10 = vector.load %arg3[%c0_6, %c0_7, %c0_8] : memref<7x256x256xbf16, #tpu.memory_space<vmem>>, vector<1x256x256xbf16>
    %11 = vector.shape_cast %10 : vector<1x256x256xbf16> to vector<256x256xbf16>
    %cst_9 = arith.constant dense<0.000000e+00> : vector<16x256xf32>
    %12 = tpu.matmul %9, %11, %cst_9 {dimension_numbers = #tpu.dot_dimension_numbers<[1], [0], [0], [1], [0, 0, 1, 1], [], []>} : vector<16x256xbf16>, vector<256x256xbf16>, vector<16x256xf32> -> vector<16x256xf32>
    %13 = vector.extract_strided_slice %0 {offsets = [1, 0], sizes = [1, 256], strides = [1, 1]} : vector<16x256xf32> to vector<1x256xf32>
    %14 = vector.broadcast %13 : vector<1x256xf32> to vector<16x256xf32>
    %15 = arith.addf %12, %14 : vector<16x256xf32>
    %cst_10 = arith.constant 0.000000e+00 : f32
    %16 = vector.broadcast %cst_10 : f32 to vector<16x256xf32>
    %17 = arith.maximumf %15, %16 : vector<16x256xf32>
    %18 = arith.truncf %17 : vector<16x256xf32> to vector<16x256xbf16>
    %c1 = arith.constant 1 : index
    %c0_11 = arith.constant 0 : index
    %c0_12 = arith.constant 0 : index
    %19 = vector.load %arg3[%c1, %c0_11, %c0_12] : memref<7x256x256xbf16, #tpu.memory_space<vmem>>, vector<1x256x256xbf16>
    %20 = vector.shape_cast %19 : vector<1x256x256xbf16> to vector<256x256xbf16>
    %cst_13 = arith.constant dense<0.000000e+00> : vector<16x256xf32>
    %21 = tpu.matmul %18, %20, %cst_13 {dimension_numbers = #tpu.dot_dimension_numbers<[1], [0], [0], [1], [0, 0, 1, 1], [], []>} : vector<16x256xbf16>, vector<256x256xbf16>, vector<16x256xf32> -> vector<16x256xf32>
    %22 = vector.extract_strided_slice %0 {offsets = [2, 0], sizes = [1, 256], strides = [1, 1]} : vector<16x256xf32> to vector<1x256xf32>
    %23 = vector.broadcast %22 : vector<1x256xf32> to vector<16x256xf32>
    %24 = arith.addf %21, %23 : vector<16x256xf32>
    %cst_14 = arith.constant 0.000000e+00 : f32
    %25 = vector.broadcast %cst_14 : f32 to vector<16x256xf32>
    %26 = arith.maximumf %24, %25 : vector<16x256xf32>
    %27 = arith.truncf %26 : vector<16x256xf32> to vector<16x256xbf16>
    %c2 = arith.constant 2 : index
    %c0_15 = arith.constant 0 : index
    %c0_16 = arith.constant 0 : index
    %28 = vector.load %arg3[%c2, %c0_15, %c0_16] : memref<7x256x256xbf16, #tpu.memory_space<vmem>>, vector<1x256x256xbf16>
    %29 = vector.shape_cast %28 : vector<1x256x256xbf16> to vector<256x256xbf16>
    %cst_17 = arith.constant dense<0.000000e+00> : vector<16x256xf32>
    %30 = tpu.matmul %27, %29, %cst_17 {dimension_numbers = #tpu.dot_dimension_numbers<[1], [0], [0], [1], [0, 0, 1, 1], [], []>} : vector<16x256xbf16>, vector<256x256xbf16>, vector<16x256xf32> -> vector<16x256xf32>
    %31 = vector.extract_strided_slice %0 {offsets = [3, 0], sizes = [1, 256], strides = [1, 1]} : vector<16x256xf32> to vector<1x256xf32>
    %32 = vector.broadcast %31 : vector<1x256xf32> to vector<16x256xf32>
    %33 = arith.addf %30, %32 : vector<16x256xf32>
    %cst_18 = arith.constant 0.000000e+00 : f32
    %34 = vector.broadcast %cst_18 : f32 to vector<16x256xf32>
    %35 = arith.maximumf %33, %34 : vector<16x256xf32>
    %36 = arith.truncf %35 : vector<16x256xf32> to vector<16x256xbf16>
    %c3 = arith.constant 3 : index
    %c0_19 = arith.constant 0 : index
    %c0_20 = arith.constant 0 : index
    %37 = vector.load %arg3[%c3, %c0_19, %c0_20] : memref<7x256x256xbf16, #tpu.memory_space<vmem>>, vector<1x256x256xbf16>
    %38 = vector.shape_cast %37 : vector<1x256x256xbf16> to vector<256x256xbf16>
    %cst_21 = arith.constant dense<0.000000e+00> : vector<16x256xf32>
    %39 = tpu.matmul %36, %38, %cst_21 {dimension_numbers = #tpu.dot_dimension_numbers<[1], [0], [0], [1], [0, 0, 1, 1], [], []>} : vector<16x256xbf16>, vector<256x256xbf16>, vector<16x256xf32> -> vector<16x256xf32>
    %40 = vector.extract_strided_slice %0 {offsets = [4, 0], sizes = [1, 256], strides = [1, 1]} : vector<16x256xf32> to vector<1x256xf32>
    %41 = vector.broadcast %40 : vector<1x256xf32> to vector<16x256xf32>
    %42 = arith.addf %39, %41 : vector<16x256xf32>
    %cst_22 = arith.constant 0.000000e+00 : f32
    %43 = vector.broadcast %cst_22 : f32 to vector<16x256xf32>
    %44 = arith.maximumf %42, %43 : vector<16x256xf32>
    %45 = arith.truncf %44 : vector<16x256xf32> to vector<16x256xbf16>
    %c4 = arith.constant 4 : index
    %c0_23 = arith.constant 0 : index
    %c0_24 = arith.constant 0 : index
    %46 = vector.load %arg3[%c4, %c0_23, %c0_24] : memref<7x256x256xbf16, #tpu.memory_space<vmem>>, vector<1x256x256xbf16>
    %47 = vector.shape_cast %46 : vector<1x256x256xbf16> to vector<256x256xbf16>
    %cst_25 = arith.constant dense<0.000000e+00> : vector<16x256xf32>
    %48 = tpu.matmul %45, %47, %cst_25 {dimension_numbers = #tpu.dot_dimension_numbers<[1], [0], [0], [1], [0, 0, 1, 1], [], []>} : vector<16x256xbf16>, vector<256x256xbf16>, vector<16x256xf32> -> vector<16x256xf32>
    %49 = vector.extract_strided_slice %0 {offsets = [5, 0], sizes = [1, 256], strides = [1, 1]} : vector<16x256xf32> to vector<1x256xf32>
    %50 = vector.broadcast %49 : vector<1x256xf32> to vector<16x256xf32>
    %51 = arith.addf %48, %50 : vector<16x256xf32>
    %cst_26 = arith.constant 0.000000e+00 : f32
    %52 = vector.broadcast %cst_26 : f32 to vector<16x256xf32>
    %53 = arith.maximumf %51, %52 : vector<16x256xf32>
    %54 = arith.truncf %53 : vector<16x256xf32> to vector<16x256xbf16>
    %c5 = arith.constant 5 : index
    %c0_27 = arith.constant 0 : index
    %c0_28 = arith.constant 0 : index
    %55 = vector.load %arg3[%c5, %c0_27, %c0_28] : memref<7x256x256xbf16, #tpu.memory_space<vmem>>, vector<1x256x256xbf16>
    %56 = vector.shape_cast %55 : vector<1x256x256xbf16> to vector<256x256xbf16>
    %cst_29 = arith.constant dense<0.000000e+00> : vector<16x256xf32>
    %57 = tpu.matmul %54, %56, %cst_29 {dimension_numbers = #tpu.dot_dimension_numbers<[1], [0], [0], [1], [0, 0, 1, 1], [], []>} : vector<16x256xbf16>, vector<256x256xbf16>, vector<16x256xf32> -> vector<16x256xf32>
    %58 = vector.extract_strided_slice %0 {offsets = [6, 0], sizes = [1, 256], strides = [1, 1]} : vector<16x256xf32> to vector<1x256xf32>
    %59 = vector.broadcast %58 : vector<1x256xf32> to vector<16x256xf32>
    %60 = arith.addf %57, %59 : vector<16x256xf32>
    %cst_30 = arith.constant 0.000000e+00 : f32
    %61 = vector.broadcast %cst_30 : f32 to vector<16x256xf32>
    %62 = arith.maximumf %60, %61 : vector<16x256xf32>
    %63 = arith.truncf %62 : vector<16x256xf32> to vector<16x256xbf16>
    %c6 = arith.constant 6 : index
    %c0_31 = arith.constant 0 : index
    %c0_32 = arith.constant 0 : index
    %64 = vector.load %arg3[%c6, %c0_31, %c0_32] : memref<7x256x256xbf16, #tpu.memory_space<vmem>>, vector<1x256x256xbf16>
    %65 = vector.shape_cast %64 : vector<1x256x256xbf16> to vector<256x256xbf16>
    %cst_33 = arith.constant dense<0.000000e+00> : vector<16x256xf32>
    %66 = tpu.matmul %63, %65, %cst_33 {dimension_numbers = #tpu.dot_dimension_numbers<[1], [0], [0], [1], [0, 0, 1, 1], [], []>} : vector<16x256xbf16>, vector<256x256xbf16>, vector<16x256xf32> -> vector<16x256xf32>
    %67 = vector.extract_strided_slice %0 {offsets = [7, 0], sizes = [1, 256], strides = [1, 1]} : vector<16x256xf32> to vector<1x256xf32>
    %68 = vector.broadcast %67 : vector<1x256xf32> to vector<16x256xf32>
    %69 = arith.addf %66, %68 : vector<16x256xf32>
    %cst_34 = arith.constant 0.000000e+00 : f32
    %70 = vector.broadcast %cst_34 : f32 to vector<16x256xf32>
    %71 = arith.maximumf %69, %70 : vector<16x256xf32>
    %72 = arith.truncf %71 : vector<16x256xf32> to vector<16x256xbf16>
    %c0_35 = arith.constant 0 : index
    %c0_36 = arith.constant 0 : index
    %c0_37 = arith.constant 0 : index
    %73 = vector.load %arg4[%c0_35, %c0_36, %c0_37] : memref<4x256x256xbf16, #tpu.memory_space<vmem>>, vector<1x256x256xbf16>
    %74 = vector.shape_cast %73 : vector<1x256x256xbf16> to vector<256x256xbf16>
    %cst_38 = arith.constant dense<0.000000e+00> : vector<16x256xf32>
    %75 = tpu.matmul %18, %74, %cst_38 {dimension_numbers = #tpu.dot_dimension_numbers<[1], [0], [0], [1], [0, 0, 1, 1], [], []>} : vector<16x256xbf16>, vector<256x256xbf16>, vector<16x256xf32> -> vector<16x256xf32>
    %c1_39 = arith.constant 1 : index
    %c0_40 = arith.constant 0 : index
    %c0_41 = arith.constant 0 : index
    %76 = vector.load %arg4[%c1_39, %c0_40, %c0_41] : memref<4x256x256xbf16, #tpu.memory_space<vmem>>, vector<1x256x256xbf16>
    %77 = vector.shape_cast %76 : vector<1x256x256xbf16> to vector<256x256xbf16>
    %cst_42 = arith.constant dense<0.000000e+00> : vector<16x256xf32>
    %78 = tpu.matmul %36, %77, %cst_42 {dimension_numbers = #tpu.dot_dimension_numbers<[1], [0], [0], [1], [0, 0, 1, 1], [], []>} : vector<16x256xbf16>, vector<256x256xbf16>, vector<16x256xf32> -> vector<16x256xf32>
    %79 = arith.addf %75, %78 : vector<16x256xf32>
    %c2_43 = arith.constant 2 : index
    %c0_44 = arith.constant 0 : index
    %c0_45 = arith.constant 0 : index
    %80 = vector.load %arg4[%c2_43, %c0_44, %c0_45] : memref<4x256x256xbf16, #tpu.memory_space<vmem>>, vector<1x256x256xbf16>
    %81 = vector.shape_cast %80 : vector<1x256x256xbf16> to vector<256x256xbf16>
    %cst_46 = arith.constant dense<0.000000e+00> : vector<16x256xf32>
    %82 = tpu.matmul %54, %81, %cst_46 {dimension_numbers = #tpu.dot_dimension_numbers<[1], [0], [0], [1], [0, 0, 1, 1], [], []>} : vector<16x256xbf16>, vector<256x256xbf16>, vector<16x256xf32> -> vector<16x256xf32>
    %83 = arith.addf %79, %82 : vector<16x256xf32>
    %c3_47 = arith.constant 3 : index
    %c0_48 = arith.constant 0 : index
    %c0_49 = arith.constant 0 : index
    %84 = vector.load %arg4[%c3_47, %c0_48, %c0_49] : memref<4x256x256xbf16, #tpu.memory_space<vmem>>, vector<1x256x256xbf16>
    %85 = vector.shape_cast %84 : vector<1x256x256xbf16> to vector<256x256xbf16>
    %cst_50 = arith.constant dense<0.000000e+00> : vector<16x256xf32>
    %86 = tpu.matmul %72, %85, %cst_50 {dimension_numbers = #tpu.dot_dimension_numbers<[1], [0], [0], [1], [0, 0, 1, 1], [], []>} : vector<16x256xbf16>, vector<256x256xbf16>, vector<16x256xf32> -> vector<16x256xf32>
    %87 = arith.addf %83, %86 : vector<16x256xf32>
    %c8 = arith.constant 8 : index
    %c0_51 = arith.constant 0 : index
    %88 = vector.load %arg5[%c8, %c0_51] : memref<16x256xf32, #tpu.memory_space<vmem>>, vector<1x256xf32>
    %89 = vector.broadcast %88 : vector<1x256xf32> to vector<16x256xf32>
    %90 = arith.addf %87, %89 : vector<16x256xf32>
    %c0_52 = arith.constant 0 : index
    %c0_53 = arith.constant 0 : index
    %91 = vector.load %arg6[%c0_52, %c0_53] : memref<16x256xf32, #tpu.memory_space<vmem>>, vector<16x256xf32>
    tpu.vector_store %arg6[%c0_52, %c0_53], %90 {strides = array<i32>} : memref<16x256xf32, #tpu.memory_space<vmem>>, vector<16x256xf32>,
    return
  }
  func.func @transform_0(%arg0: i32) -> (i32, i32) {
    %c0_i32 = arith.constant 0 : i32
    %c0_i32_0 = arith.constant 0 : i32
    return %arg0, %c0_i32 : i32, i32
  }
  func.func @transform_1(%arg0: i32) -> (i32, i32) {
    %c0_i32 = arith.constant 0 : i32
    %c0_i32_0 = arith.constant 0 : i32
    %c0_i32_1 = arith.constant 0 : i32
    return %c0_i32, %c0_i32_0 : i32, i32
  }
  func.func @transform_2(%arg0: i32) -> (i32, i32, i32) {
    %c0_i32 = arith.constant 0 : i32
    %c0_i32_0 = arith.constant 0 : i32
    %c0_i32_1 = arith.constant 0 : i32
    %c0_i32_2 = arith.constant 0 : i32
    return %c0_i32, %c0_i32_0, %c0_i32_1 : i32, i32, i32
  }
  func.func @transform_3(%arg0: i32) -> (i32, i32, i32) {
    %c0_i32 = arith.constant 0 : i32
    %c0_i32_0 = arith.constant 0 : i32
    %c0_i32_1 = arith.constant 0 : i32
    %c0_i32_2 = arith.constant 0 : i32
    return %c0_i32, %c0_i32_0, %c0_i32_1 : i32, i32, i32
  }
  func.func @transform_4(%arg0: i32) -> (i32, i32) {
    %c0_i32 = arith.constant 0 : i32
    %c0_i32_0 = arith.constant 0 : i32
    %c0_i32_1 = arith.constant 0 : i32
    return %c0_i32, %c0_i32_0 : i32, i32
  }
  func.func @transform_5(%arg0: i32) -> (i32, i32) {
    %c0_i32 = arith.constant 0 : i32
    %c0_i32_0 = arith.constant 0 : i32
    return %arg0, %c0_i32 : i32, i32
  }
}

</mosaic_0001>

<bundles_post_ra>
// kernel: tpu_custom_call.1
= control target key start
LH: loop header
LB: loop body
LE: loop exit
PB: predicated region body
PF: predicated region fallthrough
CT: control target
= control target key end

     0   :  { %10 = vsyncpa [#allocation3], 0  ;;  %s4673_s0 = inlined_call_operand.hbm [shape: bf16[16,512], index: 0, kind: input, shape index: {}]   ;;  %s4674_s1 = inlined_call_operand.hbm [shape: bf16[512,256], index: 1, kind: input, shape index: {}]   ;;  %s4675_s2 = inlined_call_operand.hbm [shape: bf16[7,256,256], index: 2, kind: input, shape index: {}]   ;;  %s4676_s3 = inlined_call_operand.hbm [shape: bf16[4,256,256], index: 3, kind: input, shape index: {}]   ;;  %s4677_s4 = inlined_call_operand.hbm [shape: f32[16,256], index: 4, kind: input, shape index: {}]   ;;  %s4678_s5 = inlined_call_operand.hbm [shape: f32[16,256], index: 5, kind: output, shape index: {}]  }
   0x1   :  { %11 = vsyncpa [#allocation6], 0 }
   0x2   :  { %12 = vsyncpa [#allocation9], 0 }
   0x3   :  { %13 = vsyncpa [#allocation4], 0  ;;  %s4529_s18 = smov [#allocation5]  }
   0x4   :  { %s31_s19 = sshll.u32 %s4529_s18, 4  ;;  %s32_s19 = int_to_ptr.vmem [resolvable:$true] %s31_s19 }
   0x5   :  { %s4409_s20 = scalar_lea.vmem %s32_s19, 8192  ;;  %p4414_p1 = scmp.lt.s32.totalorder %s32_s19, %s32_s19 }
   0x6   :  { %p4410_p0 = scmp.ne.s32.totalorder %s32_s19, %s4409_s20  ;;  %p4415_p2 = scmp.lt.s32.totalorder %s4409_s20, %s4409_s20 }
   0x8   :  { %p4416_p3 = por %p4415_p2, %p4414_p1 }
   0xa   :  { %p4417_p4 = pnand %p4416_p3, %p4410_p0 }
   0xc   :  { %4420 = shalt.err (!%p4417_p4)
}
   0xd   :  { %s4530_s21 = smov 128   ;;  %s4531_s22 = smov 8  }
   0xe   :  { %37 = dma.hbm_to_vmem [thread:$0]  %s4674_s1, 8192, %s32_s19, [#allocation6], %s4530_s21, %s4530_s21, %s4531_s22  }
   0xf   :  { %s4532_s25 = smov [#allocation8]   ;;  %s4533_s27 = smov [#allocation2]  }
  0x10   :  { %s55_s26 = sshll.u32 %s4532_s25, 4  ;;  %s19_s28 = sshll.u32 %s4533_s27, 4  ;;  %s56_s26 = int_to_ptr.vmem [resolvable:$true] %s55_s26  ;;  %s20_s28 = int_to_ptr.vmem [resolvable:$true] %s19_s28 }
  0x11   :  { %s4429_s29 = scalar_lea.vmem %s56_s26, 16384  ;;  %p4434_p6 = scmp.lt.s32.totalorder %s56_s26, %s56_s26 }
  0x12   :  { %p4430_p5 = scmp.ne.s32.totalorder %s56_s26, %s4429_s29  ;;  %p4435_p7 = scmp.lt.s32.totalorder %s4429_s29, %s4429_s29 }
  0x14   :  { %p4436_p8 = por %p4435_p7, %p4434_p6 }
  0x16   :  { %p4437_p9 = pnand %p4436_p8, %p4430_p5 }
  0x18   :  { %4440 = shalt.err (!%p4437_p9)
}
  0x19   :  { %61 = dma.hbm_to_vmem [thread:$0]  %s4676_s3, 16384, %s56_s26, [#allocation9], %s4530_s21, %s4530_s21, %s4531_s22  }
  0x1a   :  { %s4449_s1 = scalar_lea.vmem %s20_s28, 512  ;;  %p4454_p11 = scmp.lt.s32.totalorder %s20_s28, %s20_s28 }
  0x1b   :  { %p4450_p10 = scmp.ne.s32.totalorder %s20_s28, %s4449_s1  ;;  %p4455_p12 = scmp.lt.s32.totalorder %s4449_s1, %s4449_s1 }
  0x1d   :  { %p4456_p13 = por %p4455_p12, %p4454_p11 }
  0x1f   :  { %p4457_p0 = pnand %p4456_p13, %p4450_p10 }
  0x21   :  { %4460 = shalt.err (!%p4457_p0)
}
  0x22   :  { %s4534_s7 = smov 256   ;;  %s4535_s8 = smov 16  }
  0x23   :  { %25 = dma.hbm_to_vmem [thread:$0]  %s4673_s0, 512, %s20_s28, [#allocation3], %s4534_s7, %s4534_s7, %s4535_s8  }
  0x24   :  { %s4536_s11 = smov [#allocation7]   ;;  %s4537_s3 = smov [#allocation10]  }
  0x25   :  { %s43_s12 = sshll.u32 %s4536_s11, 4  ;;  %s67_s13 = sshll.u32 %s4537_s3, 4  ;;  %s44_s12 = int_to_ptr.vmem [resolvable:$true] %s43_s12  ;;  %s68_s13 = int_to_ptr.vmem [resolvable:$true] %s67_s13 }
  0x26   :  { %s4469_s14 = scalar_lea.vmem %s44_s12, 28672  ;;  %p4474_p2 = scmp.lt.s32.totalorder %s44_s12, %s44_s12 }
  0x27   :  { %p4470_p1 = scmp.ne.s32.totalorder %s44_s12, %s4469_s14  ;;  %p4475_p3 = scmp.lt.s32.totalorder %s4469_s14, %s4469_s14 }
  0x29   :  { %p4476_p4 = por %p4475_p3, %p4474_p2 }
  0x2b   :  { %p4477_p5 = pnand %p4476_p4, %p4470_p1 }
  0x2d   :  { %4480 = shalt.err (!%p4477_p5)
}
  0x2e   :  { %49 = dma.hbm_to_vmem [thread:$0]  %s4675_s2, 28672, %s44_s12, [#allocation6], %s4530_s21, %s4530_s21, %s4531_s22  }
  0x2f   :  { %s4489_s0 = scalar_lea.vmem %s68_s13, 512  ;;  %p4494_p7 = scmp.lt.s32.totalorder %s68_s13, %s68_s13 }
  0x30   :  { %p4490_p6 = scmp.ne.s32.totalorder %s68_s13, %s4489_s0  ;;  %p4495_p8 = scmp.lt.s32.totalorder %s4489_s0, %s4489_s0 }
  0x32   :  { %p4496_p9 = por %p4495_p8, %p4494_p7 }
  0x34   :  { %p4497_p10 = pnand %p4496_p9, %p4490_p6 }
  0x36   :  { %4500 = shalt.err (!%p4497_p10)
}
  0x37   :  { %73 = dma.hbm_to_vmem [thread:$0]  %s4677_s4, 512, %s68_s13, [#allocation9], %s4534_s7, %s4534_s7, %s4535_s8  }
  0x38   :  { %4521 = dma.done.wait [#allocation3], 512  }
  0x39   :  { %4522 = vsyncadd [#allocation3], 4294966784 }
  0x3a   :  { %4523 = dma.done.wait [#allocation6], 36864  }
  0x3b   :  { %4524 = vsyncadd [#allocation6], 4294930432 }
  0x3c   :  { %4525 = dma.done.wait [#allocation9], 16896  }
  0x3d   :  { %4526 = vsyncadd [#allocation9], 4294950400  ;;  %v3769_v0 = vld [vmem:[#allocation5 + $0x74] ss:$8 sps:$4 sm:$0xff]   ;;  %v3773_v2 = vld [vmem:[#allocation5 + $0x70] ss:$8 sps:$4 sm:$0xff]  }
  0x3e   :  { %v3771_v1 = vld [vmem:[#allocation5 + $0x174] ss:$8 sps:$4 sm:$0xff]   ;;  %507 = vmatprep.subr.bf16.mxu0 %v3769_v0  ;;  %v3774_v3 = vld [vmem:[#allocation5 + $0x170] ss:$8 sps:$4 sm:$0xff]   ;;  %v3775_v4 = vld [vmem:[#allocation5 + $0x64] ss:$8 sps:$4 sm:$0xff]  }
  0x3f   :  { %550 = vmatprep.subr.bf16.mxu1 %v3771_v1  ;;  %508 = vmatpush1.bf16.msra.mxu0 %v3773_v2  ;;  %v3777_v5 = vld [vmem:[#allocation5 + $0x164] ss:$8 sps:$4 sm:$0xff]   ;;  %v3779_v6 = vld [vmem:[#allocation5 + $0x60] ss:$8 sps:$4 sm:$0xff]   ;;  %v3781_v8 = vld [vmem:[#allocation5 + $0x54] ss:$8 sps:$4 sm:$0xff]  }
  0x40   :  { %551 = vmatpush1.bf16.msra.mxu1 %v3774_v3  ;;  %509 = vmatprep.subr.bf16.mxu0 %v3775_v4  ;;  %v3780_v7 = vld [vmem:[#allocation5 + $0x160] ss:$8 sps:$4 sm:$0xff]   ;;  %v3783_v9 = vld [vmem:[#allocation5 + $0x154] ss:$8 sps:$4 sm:$0xff]   ;;  %v3785_v10 = vld [vmem:[#allocation5 + $0x50] ss:$8 sps:$4 sm:$0xff]  }
  0x41   :  { %552 = vmatprep.subr.bf16.mxu1 %v3777_v5  ;;  %v3786_v11 = vld [vmem:[#allocation5 + $0x150] ss:$8 sps:$4 sm:$0xff]   ;;  %v3787_v12 = vld [vmem:[#allocation5 + $0x44] ss:$8 sps:$4 sm:$0xff]   ;;  %v3791_v14 = vld [vmem:[#allocation5 + $0x40] ss:$8 sps:$4 sm:$0xff]  }
  0x42   :  { %v3789_v13 = vld [vmem:[#allocation5 + $0x144] ss:$8 sps:$4 sm:$0xff]   ;;  %v3792_v15 = vld [vmem:[#allocation5 + $0x140] ss:$8 sps:$4 sm:$0xff]   ;;  %v3793_v16 = vld [vmem:[#allocation5 + $0x34] ss:$8 sps:$4 sm:$0xff]  }
  0x43   :  { %510 = vmatpush1.bf16.msra.mxu0 %v3779_v6  ;;  %v3795_v17 = vld [vmem:[#allocation5 + $0x134] ss:$8 sps:$4 sm:$0xff]   ;;  %v3797_v18 = vld [vmem:[#allocation5 + $0x30] ss:$8 sps:$4 sm:$0xff]   ;;  %v3799_v20 = vld [vmem:[#allocation5 + $0x24] ss:$8 sps:$4 sm:$0xff]  }
  0x44   :  { %553 = vmatpush1.bf16.msra.mxu1 %v3780_v7  ;;  %511 = vmatprep.subr.bf16.mxu0 %v3781_v8  ;;  %v3798_v19 = vld [vmem:[#allocation5 + $0x130] ss:$8 sps:$4 sm:$0xff]   ;;  %v3801_v21 = vld [vmem:[#allocation5 + $0x124] ss:$8 sps:$4 sm:$0xff]   ;;  %v3803_v22 = vld [vmem:[#allocation5 + $0x20] ss:$8 sps:$4 sm:$0xff]  }
  0x45   :  { %554 = vmatprep.subr.bf16.mxu1 %v3783_v9  ;;  %v3804_v23 = vld [vmem:[#allocation5 + $0x120] ss:$8 sps:$4 sm:$0xff]   ;;  %v3805_v24 = vld [vmem:[#allocation5 + $0x14] ss:$8 sps:$4 sm:$0xff]   ;;  %v3809_v26 = vld [vmem:[#allocation5 + $0x10] ss:$8 sps:$4 sm:$0xff]  }
  0x46   :  { %v3807_v25 = vld [vmem:[#allocation5 + $0x114] ss:$8 sps:$4 sm:$0xff]   ;;  %v3810_v27 = vld [vmem:[#allocation5 + $0x110] ss:$8 sps:$4 sm:$0xff]   ;;  %v3811_v28 = vld [vmem:[#allocation5 + $0x4] ss:$8 sps:$4 sm:$0xff]  }
  0x47   :  { %512 = vmatpush1.bf16.msra.mxu0 %v3785_v10  ;;  %v3813_v29 = vld [vmem:[#allocation5 + $0x104] ss:$8 sps:$4 sm:$0xff]   ;;  %v3815_v30 = vld [vmem:[#allocation5] ss:$8 sps:$4 sm:$0xff]   ;;  %v3817_v32 = vld [vmem:[#allocation5 + $0xf4] ss:$8 sps:$4 sm:$0xff]  }
  0x48   :  { %555 = vmatpush1.bf16.msra.mxu1 %v3786_v11  ;;  %513 = vmatprep.subr.bf16.mxu0 %v3787_v12  ;;  %v3816_v31 = vld [vmem:[#allocation5 + $0x100] ss:$8 sps:$4 sm:$0xff]   ;;  %v3819_v33 = vld [vmem:[#allocation5 + $0x1f4] ss:$8 sps:$4 sm:$0xff]   ;;  %v3821_v34 = vld [vmem:[#allocation5 + $0xf0] ss:$8 sps:$4 sm:$0xff]  }
  0x49   :  { %556 = vmatprep.subr.bf16.mxu1 %v3789_v13  ;;  %v3822_v35 = vld [vmem:[#allocation5 + $0x1f0] ss:$8 sps:$4 sm:$0xff]   ;;  %v3823_v36 = vld [vmem:[#allocation5 + $0xe4] ss:$8 sps:$4 sm:$0xff]   ;;  %v3827_v38 = vld [vmem:[#allocation5 + $0xe0] ss:$8 sps:$4 sm:$0xff]  }
  0x4a   :  { %v3825_v37 = vld [vmem:[#allocation5 + $0x1e4] ss:$8 sps:$4 sm:$0xff]   ;;  %v3828_v39 = vld [vmem:[#allocation5 + $0x1e0] ss:$8 sps:$4 sm:$0xff]   ;;  %v3829_v40 = vld [vmem:[#allocation5 + $0xd4] ss:$8 sps:$4 sm:$0xff]  }
  0x4b   :  { %514 = vmatpush1.bf16.msra.mxu0 %v3791_v14  ;;  %v3831_v41 = vld [vmem:[#allocation5 + $0x1d4] ss:$8 sps:$4 sm:$0xff]   ;;  %v3833_v42 = vld [vmem:[#allocation5 + $0xd0] ss:$8 sps:$4 sm:$0xff]   ;;  %v3835_v44 = vld [vmem:[#allocation5 + $0xc4] ss:$8 sps:$4 sm:$0xff]  }
  0x4c   :  { %557 = vmatpush1.bf16.msra.mxu1 %v3792_v15  ;;  %515 = vmatprep.subr.bf16.mxu0 %v3793_v16  ;;  %v3834_v43 = vld [vmem:[#allocation5 + $0x1d0] ss:$8 sps:$4 sm:$0xff]   ;;  %v3837_v45 = vld [vmem:[#allocation5 + $0x1c4] ss:$8 sps:$4 sm:$0xff]   ;;  %v3839_v46 = vld [vmem:[#allocation5 + $0xc0] ss:$8 sps:$4 sm:$0xff]  }
  0x4d   :  { %558 = vmatprep.subr.bf16.mxu1 %v3795_v17  ;;  %v3840_v47 = vld [vmem:[#allocation5 + $0x1c0] ss:$8 sps:$4 sm:$0xff]   ;;  %v3841_v48 = vld [vmem:[#allocation5 + $0xb4] ss:$8 sps:$4 sm:$0xff]   ;;  %v3845_v52 = vld [vmem:[#allocation5 + $0xb0] ss:$8 sps:$4 sm:$0xff]  }
  0x4e   :  { %v3867_v49 = vld [vmem:[#allocation2 + $0x4] ss:$16 sps:$4 sm:$0xff]   ;;  %v3870_v51 = vld [vmem:[#allocation2 + $0xc] ss:$16 sps:$4 sm:$0xff]   ;;  %v3846_v53 = vld [vmem:[#allocation5 + $0x1b0] ss:$8 sps:$4 sm:$0xff]  }
  0x4f   :  { %516 = vmatpush1.bf16.msra.mxu0 %v3797_v18  ;;  %v3843_v50 = vld [vmem:[#allocation5 + $0x1b4] ss:$8 sps:$4 sm:$0xff]   ;;  %539 = vmatprep.mubr.bf16.mxu0 %v3867_v49  ;;  %v3847_v54 = vld [vmem:[#allocation5 + $0xa4] ss:$8 sps:$4 sm:$0xff]   ;;  %v3851_v56 = vld [vmem:[#allocation5 + $0xa0] ss:$8 sps:$4 sm:$0xff]  }
  0x50   :  { %559 = vmatpush1.bf16.msra.mxu1 %v3798_v19  ;;  %517 = vmatprep.subr.bf16.mxu0 %v3799_v20  ;;  %v3849_v55 = vld [vmem:[#allocation5 + $0x1a4] ss:$8 sps:$4 sm:$0xff]   ;;  %v3852_v57 = vld [vmem:[#allocation5 + $0x1a0] ss:$8 sps:$4 sm:$0xff]   ;;  %v3853_v58 = vld [vmem:[#allocation5 + $0x94] ss:$8 sps:$4 sm:$0xff]  }
  0x51   :  { %560 = vmatprep.subr.bf16.mxu1 %v3801_v21  ;;  %582 = vmatprep.mubr.bf16.mxu1 %v3870_v51  ;;  %v3855_v59 = vld [vmem:[#allocation5 + $0x194] ss:$8 sps:$4 sm:$0xff]   ;;  %v3857_v60 = vld [vmem:[#allocation5 + $0x90] ss:$8 sps:$4 sm:$0xff]   ;;  %v3859_v62 = vld [vmem:[#allocation5 + $0x84] ss:$8 sps:$4 sm:$0xff]  }
  0x52   :  { %v3858_v61 = vld [vmem:[#allocation5 + $0x190] ss:$8 sps:$4 sm:$0xff]   ;;  %v3861_v63 = vld [vmem:[#allocation5 + $0x184] ss:$8 sps:$4 sm:$0xff]   ;;  %v3863_v0 = vld [vmem:[#allocation5 + $0x80] ss:$8 sps:$4 sm:$0xff]  }
  0x53   :  { %518 = vmatpush1.bf16.msra.mxu0 %v3803_v22  ;;  %v3864_v1 = vld [vmem:[#allocation5 + $0x180] ss:$8 sps:$4 sm:$0xff]   ;;  %v3873_v4 = vld [vmem:[#allocation7 + $0x74] ss:$8 sps:$4 sm:$0xff]   ;;  %v3871_v5 = vld [vmem:[#allocation7 + $0x70] ss:$8 sps:$4 sm:$0xff]  }
  0x54   :  { %561 = vmatpush1.bf16.msra.mxu1 %v3804_v23  ;;  %519 = vmatprep.subr.bf16.mxu0 %v3805_v24  ;;  %v3865_v2 = vld [vmem:[#allocation2] ss:$16 sps:$4 sm:$0xff]   ;;  %v3868_v3 = vld [vmem:[#allocation2 + $0x8] ss:$16 sps:$4 sm:$0xff]   ;;  %v3876_v6 = vld [vmem:[#allocation7 + $0x64] ss:$8 sps:$4 sm:$0xff]  }
  0x55   :  { %562 = vmatprep.subr.bf16.mxu1 %v3807_v25  ;;  %v3874_v7 = vld [vmem:[#allocation7 + $0x60] ss:$8 sps:$4 sm:$0xff]   ;;  %v3879_v8 = vld [vmem:[#allocation7 + $0x54] ss:$8 sps:$4 sm:$0xff]   ;;  %v3877_v9 = vld [vmem:[#allocation7 + $0x50] ss:$8 sps:$4 sm:$0xff]  }
  0x56   :  { %v3882_v10 = vld [vmem:[#allocation7 + $0x44] ss:$8 sps:$4 sm:$0xff]   ;;  %v3880_v11 = vld [vmem:[#allocation7 + $0x40] ss:$8 sps:$4 sm:$0xff]   ;;  %v3885_v12 = vld [vmem:[#allocation7 + $0x34] ss:$8 sps:$4 sm:$0xff]  }
  0x57   :  { %520 = vmatpush1.bf16.msra.mxu0 %v3809_v26  ;;  %v3883_v13 = vld [vmem:[#allocation7 + $0x30] ss:$8 sps:$4 sm:$0xff]   ;;  %v3888_v14 = vld [vmem:[#allocation7 + $0x24] ss:$8 sps:$4 sm:$0xff]   ;;  %v3886_v15 = vld [vmem:[#allocation7 + $0x20] ss:$8 sps:$4 sm:$0xff]  }
  0x58   :  { %563 = vmatpush1.bf16.msra.mxu1 %v3810_v27  ;;  %521 = vmatprep.subr.bf16.mxu0 %v3811_v28  ;;  %v3891_v16 = vld [vmem:[#allocation7 + $0x14] ss:$8 sps:$4 sm:$0xff]   ;;  %v3889_v17 = vld [vmem:[#allocation7 + $0x10] ss:$8 sps:$4 sm:$0xff]   ;;  %v3894_v18 = vld [vmem:[#allocation7 + $0x4] ss:$8 sps:$4 sm:$0xff]  }
  0x59   :  { %564 = vmatprep.subr.bf16.mxu1 %v3813_v29  ;;  %v3892_v19 = vld [vmem:[#allocation7] ss:$8 sps:$4 sm:$0xff]   ;;  %v3897_v20 = vld [vmem:[#allocation7 + $0xf4] ss:$8 sps:$4 sm:$0xff]   ;;  %v3895_v21 = vld [vmem:[#allocation7 + $0xf0] ss:$8 sps:$4 sm:$0xff]  }
  0x5a   :  { %v3900_v22 = vld [vmem:[#allocation7 + $0xe4] ss:$8 sps:$4 sm:$0xff]   ;;  %v3898_v23 = vld [vmem:[#allocation7 + $0xe0] ss:$8 sps:$4 sm:$0xff]   ;;  %v3903_v24 = vld [vmem:[#allocation7 + $0xd4] ss:$8 sps:$4 sm:$0xff]  }
  0x5b   :  { %522 = vmatpush1.bf16.msra.mxu0 %v3815_v30  ;;  %v3901_v25 = vld [vmem:[#allocation7 + $0xd0] ss:$8 sps:$4 sm:$0xff]   ;;  %v3906_v26 = vld [vmem:[#allocation7 + $0xc4] ss:$8 sps:$4 sm:$0xff]   ;;  %v3904_v27 = vld [vmem:[#allocation7 + $0xc0] ss:$8 sps:$4 sm:$0xff]  }
  0x5c   :  { %565 = vmatpush1.bf16.msra.mxu1 %v3816_v31  ;;  %523 = vmatprep.subr.bf16.mxu0 %v3817_v32  ;;  %v3909_v28 = vld [vmem:[#allocation7 + $0xb4] ss:$8 sps:$4 sm:$0xff]   ;;  %v3907_v29 = vld [vmem:[#allocation7 + $0xb0] ss:$8 sps:$4 sm:$0xff]   ;;  %v3912_v30 = vld [vmem:[#allocation7 + $0xa4] ss:$8 sps:$4 sm:$0xff]  }
  0x5d   :  { %566 = vmatprep.subr.bf16.mxu1 %v3819_v33  ;;  %v3910_v31 = vld [vmem:[#allocation7 + $0xa0] ss:$8 sps:$4 sm:$0xff]   ;;  %v3915_v32 = vld [vmem:[#allocation7 + $0x94] ss:$8 sps:$4 sm:$0xff]   ;;  %v3913_v33 = vld [vmem:[#allocation7 + $0x90] ss:$8 sps:$4 sm:$0xff]  }
  0x5e   :  { %v3937_v49 = vld [vmem:[#allocation7 + $0x110] ss:$8 sps:$4 sm:$0xff]   ;;  %v3940_v51 = vld [vmem:[#allocation7 + $0x100] ss:$8 sps:$4 sm:$0xff]   ;;  %s4538_s2 = smov [#allocation11]  }
  0x5f   :  { %524 = vmatpush2.bf16.msra.mxu0 %v3821_v34  ;;  %v3918_v34 = vld [vmem:[#allocation7 + $0x84] ss:$8 sps:$4 sm:$0xff]   ;;  %s3325_s4 = sshll.u32 %s4538_s2, 4  ;;  %s3326_s4 = int_to_ptr.vmem [resolvable:$true] %s3325_s4 }
  0x60   :  { %567 = vmatpush2.bf16.msra.mxu1 %v3822_v35  ;;  %525 = vmatprep.subr.bf16.mxu0 %v3823_v36  ;;  %v3916_v35 = vld [vmem:[#allocation7 + $0x80] ss:$8 sps:$4 sm:$0xff]   ;;  %v3919_v36 = vld [vmem:[#allocation7 + $0x170] ss:$8 sps:$4 sm:$0xff]   ;;  %s4501_s19 = scalar_lea.vmem %s3326_s4, 512  ;;  %p4506_p12 = scmp.lt.s32.totalorder %s3326_s4, %s3326_s4 }
  0x61   :  { %568 = vmatprep.subr.bf16.mxu1 %v3825_v37  ;;  %v3921_v37 = vld [vmem:[#allocation7 + $0x174] ss:$8 sps:$4 sm:$0xff]   ;;  %p4502_p11 = scmp.ne.s32.totalorder %s3326_s4, %s4501_s19  ;;  %p4507_p13 = scmp.lt.s32.totalorder %s4501_s19, %s4501_s19 }
  0x63   :  { %526 = vmatpush2.bf16.msra.mxu0 %v3827_v38  ;;  %v3924_v38 = vld [vmem:[#allocation7 + $0x164] ss:$8 sps:$4 sm:$0xff]   ;;  %p4508_p0 = por %p4507_p13, %p4506_p12 }
  0x64   :  { %569 = vmatpush2.bf16.msra.mxu1 %v3828_v39  ;;  %527 = vmatprep.subr.bf16.mxu0 %v3829_v40  ;;  %v3922_v39 = vld [vmem:[#allocation7 + $0x160] ss:$8 sps:$4 sm:$0xff]   ;;  %v3927_v40 = vld [vmem:[#allocation7 + $0x154] ss:$8 sps:$4 sm:$0xff]  }
  0x65   :  { %570 = vmatprep.subr.bf16.mxu1 %v3831_v41  ;;  %v3925_v41 = vld [vmem:[#allocation7 + $0x150] ss:$8 sps:$4 sm:$0xff]   ;;  %p4509_p1 = pnand %p4508_p0, %p4502_p11 }
  0x67   :  { %528 = vmatpush2.bf16.msra.mxu0 %v3833_v42  ;;  %v3930_v42 = vld [vmem:[#allocation7 + $0x144] ss:$8 sps:$4 sm:$0xff]  }
  0x68   :  { %571 = vmatpush2.bf16.msra.mxu1 %v3834_v43  ;;  %529 = vmatprep.subr.bf16.mxu0 %v3835_v44  ;;  %v3928_v43 = vld [vmem:[#allocation7 + $0x140] ss:$8 sps:$4 sm:$0xff]   ;;  %v3933_v44 = vld [vmem:[#allocation7 + $0x134] ss:$8 sps:$4 sm:$0xff]  }
  0x69   :  { %572 = vmatprep.subr.bf16.mxu1 %v3837_v45  ;;  %v3931_v45 = vld [vmem:[#allocation7 + $0x130] ss:$8 sps:$4 sm:$0xff]  }
  0x6b   :  { %530 = vmatpush2.bf16.msra.mxu0 %v3839_v46  ;;  %v3936_v46 = vld [vmem:[#allocation7 + $0x124] ss:$8 sps:$4 sm:$0xff]  }
  0x6c   :  { %573 = vmatpush2.bf16.msra.mxu1 %v3840_v47  ;;  %531 = vmatprep.subr.bf16.mxu0 %v3841_v48  ;;  %v3934_v47 = vld [vmem:[#allocation7 + $0x120] ss:$8 sps:$4 sm:$0xff]   ;;  %v3939_v48 = vld [vmem:[#allocation7 + $0x114] ss:$8 sps:$4 sm:$0xff]  }
  0x6d   :  { %574 = vmatprep.subr.bf16.mxu1 %v3843_v50  ;;  %v3942_v50 = vld [vmem:[#allocation7 + $0x104] ss:$8 sps:$4 sm:$0xff]  }
  0x6f   :  { %532 = vmatpush2.bf16.msra.mxu0 %v3845_v52  ;;  %v3945_v52 = vld [vmem:[#allocation7 + $0x1f4] ss:$8 sps:$4 sm:$0xff]  }
  0x70   :  { %575 = vmatpush2.bf16.msra.mxu1 %v3846_v53  ;;  %533 = vmatprep.subr.bf16.mxu0 %v3847_v54  ;;  %v3943_v53 = vld [vmem:[#allocation7 + $0x1f0] ss:$8 sps:$4 sm:$0xff]   ;;  %v3948_v54 = vld [vmem:[#allocation7 + $0x1e4] ss:$8 sps:$4 sm:$0xff]  }
  0x71   :  { %576 = vmatprep.subr.bf16.mxu1 %v3849_v55  ;;  %v3946_v55 = vld [vmem:[#allocation7 + $0x1e0] ss:$8 sps:$4 sm:$0xff]  }
  0x73   :  { %534 = vmatpush2.bf16.msra.mxu0 %v3851_v56  ;;  %v3951_v56 = vld [vmem:[#allocation7 + $0x1d4] ss:$8 sps:$4 sm:$0xff]  }
  0x74   :  { %577 = vmatpush2.bf16.msra.mxu1 %v3852_v57  ;;  %535 = vmatprep.subr.bf16.mxu0 %v3853_v58  ;;  %v3949_v57 = vld [vmem:[#allocation7 + $0x1d0] ss:$8 sps:$4 sm:$0xff]   ;;  %v3954_v58 = vld [vmem:[#allocation7 + $0x1c4] ss:$8 sps:$4 sm:$0xff]  }
  0x75   :  { %578 = vmatprep.subr.bf16.mxu1 %v3855_v59  ;;  %v3952_v59 = vld [vmem:[#allocation7 + $0x1c0] ss:$8 sps:$4 sm:$0xff]  }
  0x77   :  { %536 = vmatpush2.bf16.msra.mxu0 %v3857_v60  ;;  %v3957_v60 = vld [vmem:[#allocation7 + $0x1b4] ss:$8 sps:$4 sm:$0xff]  }
  0x78   :  { %579 = vmatpush2.bf16.msra.mxu1 %v3858_v61  ;;  %537 = vmatprep.subr.bf16.mxu0 %v3859_v62  ;;  %v3955_v61 = vld [vmem:[#allocation7 + $0x1b0] ss:$8 sps:$4 sm:$0xff]   ;;  %v159_v62 = vlaneseq }
  0x79   :  { %580 = vmatprep.subr.bf16.mxu1 %v3861_v63 }
  0x7a   :  { %v4599_v63 = vshrl.u32 %v159_v62, 7 }
  0x7b   :  { %538 = vmatpush2.bf16.msra.mxu0 %v3863_v0 }
  0x7c   :  { %581 = vmatpush2.bf16.msra.mxu1 %v3864_v1  ;;  %799 = vmatprep.subr.bf16.mxu0 %v3873_v4  ;;  %v4602_v0 = vsub.s32 0, %v4599_v63  ;;  %v4604_v1 = vld [vmem:[#allocation10 + $0x8] sm:$0xff] }
  0x7d   :  { %1049 = vmatprep.subr.bf16.mxu1 %v3921_v37  ;;  %v3975_v37 = vld [vmem:[#allocation7 + $0x254] ss:$8 sps:$4 sm:$0xff]  }
  0x7e   :  { %540 = vmatmul.mubr.bf16.vlgmr.msra.gmra.mxu0 %v3865_v2  ;;  %v4606_v2 = vld [vmem:[#allocation10] sm:$0xff] }
  0x7f   :  { %583 = vmatmul.mubr.bf16.vlgmr.msra.gmra.mxu1 %v3868_v3  ;;  %800 = vmatpush1.bf16.msra.mxu0 %v3871_v5  ;;  %v166_v3 = vrot.slane %v4604_v1, %v4602_v0  ;;  %v162_v4 = vrot.slane %v4606_v2, %v4602_v0 }
  0x80   :  { %801 = vmatprep.subr.bf16.mxu0 %v3876_v6  ;;  %1050 = vmatpush1.bf16.msra.mxu1 %v3919_v36  ;;  %v3970_v36 = vld [vmem:[#allocation7 + $0x260] ss:$8 sps:$4 sm:$0xff]  }
  0x81   :  { %1051 = vmatprep.subr.bf16.mxu1 %v3924_v38  ;;  %v3973_v38 = vld [vmem:[#allocation7 + $0x250] ss:$8 sps:$4 sm:$0xff]  }
  0x83   :  { %802 = vmatpush1.bf16.msra.mxu0 %v3874_v7 }
  0x84   :  { %803 = vmatprep.subr.bf16.mxu0 %v3879_v8  ;;  %1052 = vmatpush1.bf16.msra.mxu1 %v3922_v39  ;;  %v3978_v39 = vld [vmem:[#allocation7 + $0x244] ss:$8 sps:$4 sm:$0xff]  }
  0x85   :  { %1053 = vmatprep.subr.bf16.mxu1 %v3927_v40  ;;  %v3976_v40 = vld [vmem:[#allocation7 + $0x240] ss:$8 sps:$4 sm:$0xff]  }
  0x87   :  { %804 = vmatpush1.bf16.msra.mxu0 %v3877_v9 }
  0x88   :  { %805 = vmatprep.subr.bf16.mxu0 %v3882_v10  ;;  %1054 = vmatpush1.bf16.msra.mxu1 %v3925_v41  ;;  %v3981_v41 = vld [vmem:[#allocation7 + $0x234] ss:$8 sps:$4 sm:$0xff]  }
  0x89   :  { %1055 = vmatprep.subr.bf16.mxu1 %v3930_v42  ;;  %v3979_v42 = vld [vmem:[#allocation7 + $0x230] ss:$8 sps:$4 sm:$0xff]  }
  0x8b   :  { %806 = vmatpush1.bf16.msra.mxu0 %v3880_v11 }
  0x8c   :  { %807 = vmatprep.subr.bf16.mxu0 %v3885_v12  ;;  %1056 = vmatpush1.bf16.msra.mxu1 %v3928_v43  ;;  %v3984_v43 = vld [vmem:[#allocation7 + $0x224] ss:$8 sps:$4 sm:$0xff]  }
  0x8d   :  { %1057 = vmatprep.subr.bf16.mxu1 %v3933_v44  ;;  %v3982_v44 = vld [vmem:[#allocation7 + $0x220] ss:$8 sps:$4 sm:$0xff]  }
  0x8f   :  { %808 = vmatpush1.bf16.msra.mxu0 %v3883_v13 }
  0x90   :  { %809 = vmatprep.subr.bf16.mxu0 %v3888_v14  ;;  %1058 = vmatpush1.bf16.msra.mxu1 %v3931_v45  ;;  %v3987_v45 = vld [vmem:[#allocation7 + $0x214] ss:$8 sps:$4 sm:$0xff]  }
  0x91   :  { %1059 = vmatprep.subr.bf16.mxu1 %v3936_v46  ;;  %v3985_v46 = vld [vmem:[#allocation7 + $0x210] ss:$8 sps:$4 sm:$0xff]  }
  0x93   :  { %810 = vmatpush1.bf16.msra.mxu0 %v3886_v15 }
  0x94   :  { %811 = vmatprep.subr.bf16.mxu0 %v3891_v16  ;;  %1060 = vmatpush1.bf16.msra.mxu1 %v3934_v47  ;;  %v3990_v47 = vld [vmem:[#allocation7 + $0x204] ss:$8 sps:$4 sm:$0xff]  }
  0x95   :  { %1061 = vmatprep.subr.bf16.mxu1 %v3939_v48  ;;  %v3988_v48 = vld [vmem:[#allocation7 + $0x200] ss:$8 sps:$4 sm:$0xff]  }
  0x97   :  { %812 = vmatpush1.bf16.msra.mxu0 %v3889_v17 }
  0x98   :  { %813 = vmatprep.subr.bf16.mxu0 %v3894_v18  ;;  %1062 = vmatpush1.bf16.msra.mxu1 %v3937_v49  ;;  %v3993_v49 = vld [vmem:[#allocation7 + $0x2f4] ss:$8 sps:$4 sm:$0xff]  }
  0x99   :  { %1063 = vmatprep.subr.bf16.mxu1 %v3942_v50  ;;  %v3991_v50 = vld [vmem:[#allocation7 + $0x2f0] ss:$8 sps:$4 sm:$0xff]  }
  0x9b   :  { %814 = vmatpush1.bf16.msra.mxu0 %v3892_v19 }
  0x9c   :  { %815 = vmatprep.subr.bf16.mxu0 %v3897_v20  ;;  %1064 = vmatpush1.bf16.msra.mxu1 %v3940_v51  ;;  %v3996_v51 = vld [vmem:[#allocation7 + $0x2e4] ss:$8 sps:$4 sm:$0xff]  }
  0x9d   :  { %1065 = vmatprep.subr.bf16.mxu1 %v3945_v52  ;;  %v3994_v52 = vld [vmem:[#allocation7 + $0x2e0] ss:$8 sps:$4 sm:$0xff]  }
  0x9f   :  { %816 = vmatpush2.bf16.msra.mxu0 %v3895_v21 }
  0xa0   :  { %817 = vmatprep.subr.bf16.mxu0 %v3900_v22  ;;  %1066 = vmatpush2.bf16.msra.mxu1 %v3943_v53  ;;  %v3999_v53 = vld [vmem:[#allocation7 + $0x2d4] ss:$8 sps:$4 sm:$0xff]  }
  0xa1   :  { %1067 = vmatprep.subr.bf16.mxu1 %v3948_v54  ;;  %v3997_v54 = vld [vmem:[#allocation7 + $0x2d0] ss:$8 sps:$4 sm:$0xff]  }
  0xa3   :  { %818 = vmatpush2.bf16.msra.mxu0 %v3898_v23 }
  0xa4   :  { %819 = vmatprep.subr.bf16.mxu0 %v3903_v24  ;;  %1068 = vmatpush2.bf16.msra.mxu1 %v3946_v55  ;;  %v4002_v55 = vld [vmem:[#allocation7 + $0x2c4] ss:$8 sps:$4 sm:$0xff]  }
  0xa5   :  { %1069 = vmatprep.subr.bf16.mxu1 %v3951_v56  ;;  %v4000_v56 = vld [vmem:[#allocation7 + $0x2c0] ss:$8 sps:$4 sm:$0xff]  }
  0xa7   :  { %820 = vmatpush2.bf16.msra.mxu0 %v3901_v25 }
  0xa8   :  { %821 = vmatprep.subr.bf16.mxu0 %v3906_v26  ;;  %1070 = vmatpush2.bf16.msra.mxu1 %v3949_v57  ;;  %v4005_v57 = vld [vmem:[#allocation7 + $0x2b4] ss:$8 sps:$4 sm:$0xff]  }
  0xa9   :  { %1071 = vmatprep.subr.bf16.mxu1 %v3954_v58  ;;  %v4003_v58 = vld [vmem:[#allocation7 + $0x2b0] ss:$8 sps:$4 sm:$0xff]  }
  0xab   :  { %822 = vmatpush2.bf16.msra.mxu0 %v3904_v27  ;;  %v3960_v27 = vld [vmem:[#allocation7 + $0x1a4] ss:$8 sps:$4 sm:$0xff]  }
  0xac   :  { %823 = vmatprep.subr.bf16.mxu0 %v3909_v28  ;;  %1072 = vmatpush2.bf16.msra.mxu1 %v3952_v59  ;;  %v3958_v28 = vld [vmem:[#allocation7 + $0x1a0] ss:$8 sps:$4 sm:$0xff]   ;;  %v4613_v59 = vsub.s32 1, %v4599_v63 }
  0xad   :  { %1073 = vmatprep.subr.bf16.mxu1 %v3957_v60 }
  0xae   :  { %v634_v62 = vrot.slane %v4606_v2, %v4613_v59 }
  0xaf   :  { %824 = vmatpush2.bf16.msra.mxu0 %v3907_v29  ;;  %v3963_v29 = vld [vmem:[#allocation7 + $0x194] ss:$8 sps:$4 sm:$0xff]  }
  0xb0   :  { %825 = vmatprep.subr.bf16.mxu0 %v3912_v30  ;;  %1074 = vmatpush2.bf16.msra.mxu1 %v3955_v61  ;;  %v3961_v30 = vld [vmem:[#allocation7 + $0x190] ss:$8 sps:$4 sm:$0xff]   ;;  %v638_v61 = vrot.slane %v4604_v1, %v4613_v59 }
  0xb1   :  { %1075 = vmatprep.subr.bf16.mxu1 %v3960_v27  ;;  %v4021_v27 = vld [vmem:[#allocation7 + $0x350] ss:$8 sps:$4 sm:$0xff]  }
  0xb3   :  { %826 = vmatpush2.bf16.msra.mxu0 %v3910_v31  ;;  %v3966_v31 = vld [vmem:[#allocation7 + $0x184] ss:$8 sps:$4 sm:$0xff]  }
  0xb4   :  { %827 = vmatprep.subr.bf16.mxu0 %v3915_v32  ;;  %1076 = vmatpush2.bf16.msra.mxu1 %v3958_v28  ;;  %v3964_v32 = vld [vmem:[#allocation7 + $0x180] ss:$8 sps:$4 sm:$0xff]   ;;  %v4026_v28 = vld [vmem:[#allocation7 + $0x344] ss:$8 sps:$4 sm:$0xff]  }
  0xb5   :  { %1077 = vmatprep.subr.bf16.mxu1 %v3963_v29  ;;  %v4024_v29 = vld [vmem:[#allocation7 + $0x340] ss:$8 sps:$4 sm:$0xff]  }
  0xb7   :  { %828 = vmatpush2.bf16.msra.mxu0 %v3913_v33  ;;  %v3967_v33 = vld [vmem:[#allocation7 + $0x270] ss:$8 sps:$4 sm:$0xff]  }
  0xb8   :  { %829 = vmatprep.subr.bf16.mxu0 %v3918_v34  ;;  %1078 = vmatpush2.bf16.msra.mxu1 %v3961_v30  ;;  %v3969_v34 = vld [vmem:[#allocation7 + $0x274] ss:$8 sps:$4 sm:$0xff]  }
  0xb9   :  { %1079 = vmatprep.subr.bf16.mxu1 %v3966_v31  ;;  %v4029_v30 = vld [vmem:[#allocation7 + $0x334] ss:$8 sps:$4 sm:$0xff]   ;;  %v4027_v31 = vld [vmem:[#allocation7 + $0x330] ss:$8 sps:$4 sm:$0xff]  }
  0xbb   :  { %830 = vmatpush2.bf16.msra.mxu0 %v3916_v35  ;;  %v3972_v35 = vld [vmem:[#allocation7 + $0x264] ss:$8 sps:$4 sm:$0xff]  }
  0xbc   :  { %1080 = vmatpush2.bf16.msra.mxu1 %v3964_v32  ;;  %1299 = vmatprep.subr.bf16.mxu0 %v3969_v34  ;;  %v4032_v32 = vld [vmem:[#allocation7 + $0x324] ss:$8 sps:$4 sm:$0xff]   ;;  %v4035_v34 = vld [vmem:[#allocation7 + $0x314] ss:$8 sps:$4 sm:$0xff]  }
 0x13e   :  { %v541_v5 = vpop.f32.mrf.mxu0 }
 0x13f   :  { %v584_v6 = vpop.f32.mrf.mxu1  ;;  %v542_v10 = vadd.f32 %v541_v5, %v162_v4 }
 0x140   :  { %v543_v7 = vpop.f32.mrf.mxu0 }
 0x141   :  { %v586_v8 = vpop.f32.mrf.mxu1  ;;  %v544_v9 = vadd.f32 %v543_v7, %v166_v3  ;;  %v585_v18 = vadd.f32 %v584_v6, %v542_v10 }
 0x142   :  { %v545_v11 = vpop.f32.mrf.mxu0 }
 0x143   :  { %v588_v12 = vpop.f32.mrf.mxu1  ;;  %v546_v13 = vadd.f32 %v545_v11, %v162_v4  ;;  %v587_v15 = vadd.f32 %v586_v8, %v544_v9  ;;  %v593_v24 = vmax.f32 %v585_v18, 0.0  ;;  %v4011_v18 = vld [vmem:[#allocation7 + $0x294] ss:$8 sps:$4 sm:$0xff]  }
 0x144   :  { %v547_v14 = vpop.f32.mrf.mxu0 }
 0x145   :  { %v589_v16 = vadd.f32 %v588_v12, %v546_v13  ;;  %v548_v17 = vadd.f32 %v547_v14, %v166_v3  ;;  %v590_v19 = vpop.f32.mrf.mxu1  ;;  %v594_v22 = vmax.f32 %v587_v15, 0.0 }
 0x147   :  { %v591_v20 = vadd.f32 %v590_v19, %v548_v17  ;;  %v595_v21 = vmax.f32 %v589_v16, 0.0  ;;  %v4008_v16 = vld [vmem:[#allocation7 + $0x2a4] ss:$8 sps:$4 sm:$0xff]   ;;  %v4006_v17 = vld [vmem:[#allocation7 + $0x2a0] ss:$8 sps:$4 sm:$0xff]  }
 0x148   :  { %v4009_v19 = vld [vmem:[#allocation7 + $0x290] ss:$8 sps:$4 sm:$0xff]  }
 0x149   :  { %v596_v23 = vmax.f32 %v591_v20, 0.0  ;;  %v597_v26 = vpack.c.bf16 %v595_v21, %v593_v24  ;;  %v4014_v20 = vld [vmem:[#allocation7 + $0x284] ss:$8 sps:$4 sm:$0xff]   ;;  %v4012_v21 = vld [vmem:[#allocation7 + $0x280] ss:$8 sps:$4 sm:$0xff]  }
 0x14a   :  { %v4020_v24 = vld [vmem:[#allocation7 + $0x364] ss:$8 sps:$4 sm:$0xff]  }
 0x14b   :  { %v598_v25 = vpack.c.bf16 %v596_v23, %v594_v22  ;;  %v4015_v22 = vld [vmem:[#allocation7 + $0x370] ss:$8 sps:$4 sm:$0xff]   ;;  %v4017_v23 = vld [vmem:[#allocation7 + $0x374] ss:$8 sps:$4 sm:$0xff]  }
 0x14c   :  { %1549 = vmatprep.subr.bf16.mxu1 %v4017_v23  ;;  %v4075_v23 = vld [vmem:[#allocation7 + $0x430] ss:$8 sps:$4 sm:$0xff]  }
 0x14d   :  { %831 = vmatprep.mubr.bf16.mxu0 %v598_v25  ;;  %v4018_v25 = vld [vmem:[#allocation7 + $0x360] ss:$8 sps:$4 sm:$0xff]  }
 0x14e   :  { %832 = vmatmul.mubr.bf16.vlgmr.msra.gmra.mxu0 %v597_v26  ;;  %v4023_v26 = vld [vmem:[#allocation7 + $0x354] ss:$8 sps:$4 sm:$0xff]  }
 0x14f   :  { %1300 = vmatpush1.bf16.msra.mxu0 %v3967_v33  ;;  %v4030_v33 = vld [vmem:[#allocation7 + $0x320] ss:$8 sps:$4 sm:$0xff]  }
 0x150   :  { %1301 = vmatprep.subr.bf16.mxu0 %v3972_v35  ;;  %v4033_v35 = vld [vmem:[#allocation7 + $0x310] ss:$8 sps:$4 sm:$0xff]  }
 0x153   :  { %1302 = vmatpush1.bf16.msra.mxu0 %v3970_v36  ;;  %v4038_v36 = vld [vmem:[#allocation7 + $0x304] ss:$8 sps:$4 sm:$0xff]  }
 0x154   :  { %1303 = vmatprep.subr.bf16.mxu0 %v3975_v37  ;;  %v4036_v37 = vld [vmem:[#allocation7 + $0x300] ss:$8 sps:$4 sm:$0xff]  }
 0x157   :  { %1304 = vmatpush1.bf16.msra.mxu0 %v3973_v38  ;;  %v4041_v38 = vld [vmem:[#allocation7 + $0x3f4] ss:$8 sps:$4 sm:$0xff]  }
 0x158   :  { %1305 = vmatprep.subr.bf16.mxu0 %v3978_v39  ;;  %v4039_v39 = vld [vmem:[#allocation7 + $0x3f0] ss:$8 sps:$4 sm:$0xff]  }
 0x15b   :  { %1306 = vmatpush1.bf16.msra.mxu0 %v3976_v40  ;;  %v4044_v40 = vld [vmem:[#allocation7 + $0x3e4] ss:$8 sps:$4 sm:$0xff]  }
 0x15c   :  { %1307 = vmatprep.subr.bf16.mxu0 %v3981_v41  ;;  %v4042_v41 = vld [vmem:[#allocation7 + $0x3e0] ss:$8 sps:$4 sm:$0xff]  }
 0x15f   :  { %1308 = vmatpush1.bf16.msra.mxu0 %v3979_v42  ;;  %v4047_v42 = vld [vmem:[#allocation7 + $0x3d4] ss:$8 sps:$4 sm:$0xff]  }
 0x160   :  { %1309 = vmatprep.subr.bf16.mxu0 %v3984_v43  ;;  %v4045_v43 = vld [vmem:[#allocation7 + $0x3d0] ss:$8 sps:$4 sm:$0xff]  }
 0x163   :  { %1310 = vmatpush1.bf16.msra.mxu0 %v3982_v44  ;;  %v4050_v44 = vld [vmem:[#allocation7 + $0x3c4] ss:$8 sps:$4 sm:$0xff]  }
 0x164   :  { %1311 = vmatprep.subr.bf16.mxu0 %v3987_v45  ;;  %v4048_v45 = vld [vmem:[#allocation7 + $0x3c0] ss:$8 sps:$4 sm:$0xff]  }
 0x167   :  { %1312 = vmatpush1.bf16.msra.mxu0 %v3985_v46  ;;  %v4053_v46 = vld [vmem:[#allocation7 + $0x3b4] ss:$8 sps:$4 sm:$0xff]  }
 0x168   :  { %1313 = vmatprep.subr.bf16.mxu0 %v3990_v47  ;;  %v4051_v47 = vld [vmem:[#allocation7 + $0x3b0] ss:$8 sps:$4 sm:$0xff]  }
 0x16b   :  { %1314 = vmatpush1.bf16.msra.mxu0 %v3988_v48  ;;  %v883_v48 = vsub.s32 2, %v4599_v63 }
 0x16c   :  { %1315 = vmatprep.subr.bf16.mxu0 %v3993_v49 }
 0x16f   :  { %1316 = vmatpush2.bf16.msra.mxu0 %v3991_v50  ;;  %v888_v50 = vrot.slane %v4604_v1, %v883_v48 }
 0x170   :  { %1317 = vmatprep.subr.bf16.mxu0 %v3996_v51  ;;  %v884_v51 = vrot.slane %v4606_v2, %v883_v48 }
 0x173   :  { %1318 = vmatpush2.bf16.msra.mxu0 %v3994_v52 }
 0x174   :  { %1319 = vmatprep.subr.bf16.mxu0 %v3999_v53 }
 0x177   :  { %1320 = vmatpush2.bf16.msra.mxu0 %v3997_v54 }
 0x178   :  { %1321 = vmatprep.subr.bf16.mxu0 %v4002_v55 }
 0x17b   :  { %1322 = vmatpush2.bf16.msra.mxu0 %v4000_v56 }
 0x17c   :  { %1323 = vmatprep.subr.bf16.mxu0 %v4005_v57 }
 0x17f   :  { %1324 = vmatpush2.bf16.msra.mxu0 %v4003_v58 }
 0x180   :  { %1325 = vmatprep.subr.bf16.mxu0 %v4008_v16  ;;  %v4068_v16 = vld [vmem:[#allocation7 + $0x464] ss:$8 sps:$4 sm:$0xff]  }
 0x183   :  { %1326 = vmatpush2.bf16.msra.mxu0 %v4006_v17  ;;  %v4066_v17 = vld [vmem:[#allocation7 + $0x460] ss:$8 sps:$4 sm:$0xff]  }
 0x184   :  { %1327 = vmatprep.subr.bf16.mxu0 %v4011_v18  ;;  %v4071_v18 = vld [vmem:[#allocation7 + $0x454] ss:$8 sps:$4 sm:$0xff]  }
 0x187   :  { %1328 = vmatpush2.bf16.msra.mxu0 %v4009_v19  ;;  %v4069_v19 = vld [vmem:[#allocation7 + $0x450] ss:$8 sps:$4 sm:$0xff]  }
 0x188   :  { %1329 = vmatprep.subr.bf16.mxu0 %v4014_v20  ;;  %v4074_v20 = vld [vmem:[#allocation7 + $0x444] ss:$8 sps:$4 sm:$0xff]  }
 0x18b   :  { %1330 = vmatpush2.bf16.msra.mxu0 %v4012_v21  ;;  %v4072_v21 = vld [vmem:[#allocation7 + $0x440] ss:$8 sps:$4 sm:$0xff]  }
 0x20e   :  { %v833_v60 = vpop.f32.mrf.mxu0 }
 0x20f   :  { %v834_v7 = vadd.f32 %v833_v60, %v634_v62 }
 0x210   :  { %v835_v3 = vpop.f32.mrf.mxu0 }
 0x211   :  { %v836_v5 = vadd.f32 %v835_v3, %v638_v61  ;;  %v842_v13 = vmax.f32 %v834_v7, 0.0  ;;  %v4054_v7 = vld [vmem:[#allocation7 + $0x3a0] ss:$8 sps:$4 sm:$0xff]  }
 0x212   :  { %v837_v4 = vpop.f32.mrf.mxu0 }
 0x213   :  { %v838_v6 = vadd.f32 %v837_v4, %v634_v62  ;;  %v843_v11 = vmax.f32 %v836_v5, 0.0 }
 0x214   :  { %v839_v8 = vpop.f32.mrf.mxu0 }
 0x215   :  { %v840_v9 = vadd.f32 %v839_v8, %v638_v61  ;;  %v844_v10 = vmax.f32 %v838_v6, 0.0  ;;  %v4056_v6 = vld [vmem:[#allocation7 + $0x3a4] ss:$8 sps:$4 sm:$0xff]   ;;  %v4059_v8 = vld [vmem:[#allocation7 + $0x394] ss:$8 sps:$4 sm:$0xff]  }
 0x217   :  { %v845_v12 = vmax.f32 %v840_v9, 0.0  ;;  %v4621_v15 = vpack.c.bf16 %v844_v10, %v842_v13  ;;  %v4057_v9 = vld [vmem:[#allocation7 + $0x390] ss:$8 sps:$4 sm:$0xff]   ;;  %v4062_v10 = vld [vmem:[#allocation7 + $0x384] ss:$8 sps:$4 sm:$0xff]  }
 0x218   :  { %v4065_v13 = vld [vmem:[#allocation7 + $0x474] ss:$8 sps:$4 sm:$0xff]  }
 0x219   :  { %v4619_v14 = vpack.c.bf16 %v845_v12, %v843_v11  ;;  %v4060_v11 = vld [vmem:[#allocation7 + $0x380] ss:$8 sps:$4 sm:$0xff]   ;;  %v4063_v12 = vld [vmem:[#allocation7 + $0x470] ss:$8 sps:$4 sm:$0xff]   ;;  %1799 = vmatprep.subr.bf16.mxu0 %v4065_v13 }
 0x21a   :  { %v4123_v13 = vld [vmem:[#allocation7 + $0x530] ss:$8 sps:$4 sm:$0xff]  }
 0x21b   :  { %1081 = vmatprep.mubr.bf16.mxu1 %v4619_v14 }
 0x21c   :  { %1082 = vmatmul.mubr.bf16.vlgmr.msra.gmra.mxu1 %v4621_v15 }
 0x21d   :  { %1550 = vmatpush1.bf16.msra.mxu1 %v4015_v22  ;;  %v4077_v22 = vld [vmem:[#allocation7 + $0x434] ss:$8 sps:$4 sm:$0xff]  }
 0x21e   :  { %1551 = vmatprep.subr.bf16.mxu1 %v4020_v24  ;;  %v4080_v24 = vld [vmem:[#allocation7 + $0x424] ss:$8 sps:$4 sm:$0xff]  }
 0x221   :  { %1552 = vmatpush1.bf16.msra.mxu1 %v4018_v25  ;;  %v4078_v25 = vld [vmem:[#allocation7 + $0x420] ss:$8 sps:$4 sm:$0xff]  }
 0x222   :  { %1553 = vmatprep.subr.bf16.mxu1 %v4023_v26  ;;  %v4083_v26 = vld [vmem:[#allocation7 + $0x414] ss:$8 sps:$4 sm:$0xff]  }
 0x225   :  { %1554 = vmatpush1.bf16.msra.mxu1 %v4021_v27  ;;  %v4081_v27 = vld [vmem:[#allocation7 + $0x410] ss:$8 sps:$4 sm:$0xff]  }
 0x226   :  { %1555 = vmatprep.subr.bf16.mxu1 %v4026_v28  ;;  %v4086_v28 = vld [vmem:[#allocation7 + $0x404] ss:$8 sps:$4 sm:$0xff]  }
 0x229   :  { %1556 = vmatpush1.bf16.msra.mxu1 %v4024_v29  ;;  %v4084_v29 = vld [vmem:[#allocation7 + $0x400] ss:$8 sps:$4 sm:$0xff]  }
 0x22a   :  { %1557 = vmatprep.subr.bf16.mxu1 %v4029_v30  ;;  %v4089_v30 = vld [vmem:[#allocation7 + $0x4f4] ss:$8 sps:$4 sm:$0xff]  }
 0x22d   :  { %1558 = vmatpush1.bf16.msra.mxu1 %v4027_v31  ;;  %v4087_v31 = vld [vmem:[#allocation7 + $0x4f0] ss:$8 sps:$4 sm:$0xff]  }
 0x22e   :  { %1559 = vmatprep.subr.bf16.mxu1 %v4032_v32  ;;  %v4092_v32 = vld [vmem:[#allocation7 + $0x4e4] ss:$8 sps:$4 sm:$0xff]  }
 0x231   :  { %1560 = vmatpush1.bf16.msra.mxu1 %v4030_v33  ;;  %v4090_v33 = vld [vmem:[#allocation7 + $0x4e0] ss:$8 sps:$4 sm:$0xff]  }
 0x232   :  { %1561 = vmatprep.subr.bf16.mxu1 %v4035_v34  ;;  %v4095_v34 = vld [vmem:[#allocation7 + $0x4d4] ss:$8 sps:$4 sm:$0xff]  }
 0x235   :  { %1562 = vmatpush1.bf16.msra.mxu1 %v4033_v35  ;;  %v4093_v35 = vld [vmem:[#allocation7 + $0x4d0] ss:$8 sps:$4 sm:$0xff]  }
 0x236   :  { %1563 = vmatprep.subr.bf16.mxu1 %v4038_v36  ;;  %v4098_v36 = vld [vmem:[#allocation7 + $0x4c4] ss:$8 sps:$4 sm:$0xff]  }
 0x239   :  { %1564 = vmatpush1.bf16.msra.mxu1 %v4036_v37  ;;  %v4096_v37 = vld [vmem:[#allocation7 + $0x4c0] ss:$8 sps:$4 sm:$0xff]  }
 0x23a   :  { %1565 = vmatprep.subr.bf16.mxu1 %v4041_v38  ;;  %v4101_v38 = vld [vmem:[#allocation7 + $0x4b4] ss:$8 sps:$4 sm:$0xff]  }
 0x23d   :  { %1566 = vmatpush2.bf16.msra.mxu1 %v4039_v39  ;;  %v4099_v39 = vld [vmem:[#allocation7 + $0x4b0] ss:$8 sps:$4 sm:$0xff]  }
 0x23e   :  { %1567 = vmatprep.subr.bf16.mxu1 %v4044_v40  ;;  %v1133_v40 = vsub.s32 3, %v4599_v63 }
 0x241   :  { %1568 = vmatpush2.bf16.msra.mxu1 %v4042_v41 }
 0x242   :  { %1569 = vmatprep.subr.bf16.mxu1 %v4047_v42  ;;  %v1138_v42 = vrot.slane %v4604_v1, %v1133_v40 }
 0x245   :  { %1570 = vmatpush2.bf16.msra.mxu1 %v4045_v43  ;;  %v1134_v43 = vrot.slane %v4606_v2, %v1133_v40 }
 0x246   :  { %1571 = vmatprep.subr.bf16.mxu1 %v4050_v44 }
 0x249   :  { %1572 = vmatpush2.bf16.msra.mxu1 %v4048_v45 }
 0x24a   :  { %1573 = vmatprep.subr.bf16.mxu1 %v4053_v46 }
 0x24d   :  { %1574 = vmatpush2.bf16.msra.mxu1 %v4051_v47 }
 0x24e   :  { %1575 = vmatprep.subr.bf16.mxu1 %v4056_v6  ;;  %v4116_v6 = vld [vmem:[#allocation7 + $0x564] ss:$8 sps:$4 sm:$0xff]  }
 0x251   :  { %1576 = vmatpush2.bf16.msra.mxu1 %v4054_v7  ;;  %v4114_v7 = vld [vmem:[#allocation7 + $0x560] ss:$8 sps:$4 sm:$0xff]  }
 0x252   :  { %1577 = vmatprep.subr.bf16.mxu1 %v4059_v8  ;;  %v4119_v8 = vld [vmem:[#allocation7 + $0x554] ss:$8 sps:$4 sm:$0xff]  }
 0x255   :  { %1578 = vmatpush2.bf16.msra.mxu1 %v4057_v9  ;;  %v4117_v9 = vld [vmem:[#allocation7 + $0x550] ss:$8 sps:$4 sm:$0xff]  }
 0x256   :  { %1579 = vmatprep.subr.bf16.mxu1 %v4062_v10  ;;  %v4122_v10 = vld [vmem:[#allocation7 + $0x544] ss:$8 sps:$4 sm:$0xff]  }
 0x259   :  { %1580 = vmatpush2.bf16.msra.mxu1 %v4060_v11  ;;  %v4120_v11 = vld [vmem:[#allocation7 + $0x540] ss:$8 sps:$4 sm:$0xff]  }
 0x2dc   :  { %v1083_v49 = vpop.f32.mrf.mxu1 }
 0x2dd   :  { %v1084_v56 = vadd.f32 %v1083_v49, %v884_v51 }
 0x2de   :  { %v1085_v52 = vpop.f32.mrf.mxu1 }
 0x2df   :  { %v1086_v54 = vadd.f32 %v1085_v52, %v888_v50  ;;  %v1092_v3 = vmax.f32 %v1084_v56, 0.0 }
 0x2e0   :  { %v1087_v53 = vpop.f32.mrf.mxu1 }
 0x2e1   :  { %v1088_v55 = vadd.f32 %v1087_v53, %v884_v51  ;;  %v1093_v61 = vmax.f32 %v1086_v54, 0.0 }
 0x2e2   :  { %v1089_v57 = vpop.f32.mrf.mxu1 }
 0x2e3   :  { %v1090_v58 = vadd.f32 %v1089_v57, %v888_v50  ;;  %v1094_v60 = vmax.f32 %v1088_v55, 0.0  ;;  %v4104_v57 = vld [vmem:[#allocation7 + $0x4a4] ss:$8 sps:$4 sm:$0xff]  }
 0x2e5   :  { %v1095_v62 = vmax.f32 %v1090_v58, 0.0  ;;  %v1096_v5 = vpack.c.bf16 %v1094_v60, %v1092_v3  ;;  %v4102_v58 = vld [vmem:[#allocation7 + $0x4a0] ss:$8 sps:$4 sm:$0xff]   ;;  %v4107_v60 = vld [vmem:[#allocation7 + $0x494] ss:$8 sps:$4 sm:$0xff]  }
 0x2e6   :  { %v4108_v3 = vld [vmem:[#allocation7 + $0x480] ss:$8 sps:$4 sm:$0xff]  }
 0x2e7   :  { %v1097_v4 = vpack.c.bf16 %v1095_v62, %v1093_v61  ;;  %v4105_v61 = vld [vmem:[#allocation7 + $0x490] ss:$8 sps:$4 sm:$0xff]   ;;  %v4110_v62 = vld [vmem:[#allocation7 + $0x484] ss:$8 sps:$4 sm:$0xff]  }
 0x2e9   :  { %1331 = vmatprep.mubr.bf16.mxu0 %v1097_v4  ;;  %v4111_v4 = vld [vmem:[#allocation7 + $0x570] ss:$8 sps:$4 sm:$0xff]  }
 0x2ea   :  { %1332 = vmatmul.mubr.bf16.vlgmr.msra.gmra.mxu0 %v1096_v5  ;;  %v4113_v5 = vld [vmem:[#allocation7 + $0x574] ss:$8 sps:$4 sm:$0xff]  }
 0x2eb   :  { %1800 = vmatpush1.bf16.msra.mxu0 %v4063_v12  ;;  %2049 = vmatprep.subr.bf16.mxu1 %v4113_v5  ;;  %v4125_v12 = vld [vmem:[#allocation7 + $0x534] ss:$8 sps:$4 sm:$0xff]  }
 0x2ec   :  { %1801 = vmatprep.subr.bf16.mxu0 %v4068_v16  ;;  %v4128_v16 = vld [vmem:[#allocation7 + $0x524] ss:$8 sps:$4 sm:$0xff]  }
 0x2ef   :  { %1802 = vmatpush1.bf16.msra.mxu0 %v4066_v17  ;;  %v4126_v17 = vld [vmem:[#allocation7 + $0x520] ss:$8 sps:$4 sm:$0xff]  }
 0x2f0   :  { %1803 = vmatprep.subr.bf16.mxu0 %v4071_v18  ;;  %v4131_v18 = vld [vmem:[#allocation7 + $0x514] ss:$8 sps:$4 sm:$0xff]  }
 0x2f3   :  { %1804 = vmatpush1.bf16.msra.mxu0 %v4069_v19  ;;  %v4129_v19 = vld [vmem:[#allocation7 + $0x510] ss:$8 sps:$4 sm:$0xff]  }
 0x2f4   :  { %1805 = vmatprep.subr.bf16.mxu0 %v4074_v20  ;;  %v4134_v20 = vld [vmem:[#allocation7 + $0x504] ss:$8 sps:$4 sm:$0xff]  }
 0x2f7   :  { %1806 = vmatpush1.bf16.msra.mxu0 %v4072_v21  ;;  %v4132_v21 = vld [vmem:[#allocation7 + $0x500] ss:$8 sps:$4 sm:$0xff]  }
 0x2f8   :  { %1807 = vmatprep.subr.bf16.mxu0 %v4077_v22  ;;  %v4137_v22 = vld [vmem:[#allocation7 + $0x5f4] ss:$8 sps:$4 sm:$0xff]  }
 0x2fb   :  { %1808 = vmatpush1.bf16.msra.mxu0 %v4075_v23  ;;  %v4135_v23 = vld [vmem:[#allocation7 + $0x5f0] ss:$8 sps:$4 sm:$0xff]  }
 0x2fc   :  { %1809 = vmatprep.subr.bf16.mxu0 %v4080_v24  ;;  %v4140_v24 = vld [vmem:[#allocation7 + $0x5e4] ss:$8 sps:$4 sm:$0xff]  }
 0x2ff   :  { %1810 = vmatpush1.bf16.msra.mxu0 %v4078_v25  ;;  %v4138_v25 = vld [vmem:[#allocation7 + $0x5e0] ss:$8 sps:$4 sm:$0xff]  }
 0x300   :  { %1811 = vmatprep.subr.bf16.mxu0 %v4083_v26  ;;  %v4143_v26 = vld [vmem:[#allocation7 + $0x5d4] ss:$8 sps:$4 sm:$0xff]  }
 0x303   :  { %1812 = vmatpush1.bf16.msra.mxu0 %v4081_v27  ;;  %v4141_v27 = vld [vmem:[#allocation7 + $0x5d0] ss:$8 sps:$4 sm:$0xff]  }
 0x304   :  { %1813 = vmatprep.subr.bf16.mxu0 %v4086_v28  ;;  %v4146_v28 = vld [vmem:[#allocation7 + $0x5c4] ss:$8 sps:$4 sm:$0xff]  }
 0x307   :  { %1814 = vmatpush1.bf16.msra.mxu0 %v4084_v29  ;;  %v4144_v29 = vld [vmem:[#allocation7 + $0x5c0] ss:$8 sps:$4 sm:$0xff]  }
 0x308   :  { %1815 = vmatprep.subr.bf16.mxu0 %v4089_v30  ;;  %v4149_v30 = vld [vmem:[#allocation7 + $0x5b4] ss:$8 sps:$4 sm:$0xff]  }
 0x30b   :  { %1816 = vmatpush2.bf16.msra.mxu0 %v4087_v31  ;;  %v4147_v31 = vld [vmem:[#allocation7 + $0x5b0] ss:$8 sps:$4 sm:$0xff]  }
 0x30c   :  { %1817 = vmatprep.subr.bf16.mxu0 %v4092_v32  ;;  %v1383_v32 = vsub.s32 4, %v4599_v63 }
 0x30f   :  { %1818 = vmatpush2.bf16.msra.mxu0 %v4090_v33 }
 0x310   :  { %1819 = vmatprep.subr.bf16.mxu0 %v4095_v34  ;;  %v1388_v34 = vrot.slane %v4604_v1, %v1383_v32 }
 0x313   :  { %1820 = vmatpush2.bf16.msra.mxu0 %v4093_v35  ;;  %v1384_v35 = vrot.slane %v4606_v2, %v1383_v32  ;;  %v4171_v32 = vld [vmem:[#allocation8 + $0x130] ss:$8 sps:$4 sm:$0xff]  }
 0x314   :  { %1821 = vmatprep.subr.bf16.mxu0 %v4098_v36 }
 0x317   :  { %1822 = vmatpush2.bf16.msra.mxu0 %v4096_v37 }
 0x318   :  { %1823 = vmatprep.subr.bf16.mxu0 %v4101_v38 }
 0x31b   :  { %1824 = vmatpush2.bf16.msra.mxu0 %v4099_v39 }
 0x31c   :  { %1825 = vmatprep.subr.bf16.mxu0 %v4104_v57  ;;  %v4161_v57 = vld [vmem:[#allocation8 + $0x174] ss:$8 sps:$4 sm:$0xff]  }
 0x31f   :  { %1826 = vmatpush2.bf16.msra.mxu0 %v4102_v58  ;;  %v1633_v58 = vsub.s32 5, %v4599_v63 }
 0x320   :  { %1827 = vmatprep.subr.bf16.mxu0 %v4107_v60 }
 0x323   :  { %1828 = vmatpush2.bf16.msra.mxu0 %v4105_v61  ;;  %v1638_v61 = vrot.slane %v4604_v1, %v1633_v58  ;;  %v4255_v1 = vld [vmem:[#allocation7 + $0x670] ss:$8 sps:$4 sm:$0xff]  }
 0x324   :  { %1829 = vmatprep.subr.bf16.mxu0 %v4110_v62  ;;  %v1634_v62 = vrot.slane %v4606_v2, %v1633_v58  ;;  %v4257_v2 = vld [vmem:[#allocation7 + $0x674] ss:$8 sps:$4 sm:$0xff]   ;;  %v4189_v58 = vld [vmem:[#allocation8 + $0x1d0] ss:$8 sps:$4 sm:$0xff]  }
 0x327   :  { %1830 = vmatpush2.bf16.msra.mxu0 %v4108_v3 }
 0x328   :  { %2299 = vmatprep.subr.bf16.mxu0 %v4257_v2  ;;  %v4212_v2 = vld [vmem:[#allocation8 + $0x264] ss:$8 sps:$4 sm:$0xff]  }
 0x3aa   :  { %v1333_v41 = vpop.f32.mrf.mxu0 }
 0x3ab   :  { %v1334_v48 = vadd.f32 %v1333_v41, %v1134_v43 }
 0x3ac   :  { %v1335_v44 = vpop.f32.mrf.mxu0 }
 0x3ad   :  { %v1336_v46 = vadd.f32 %v1335_v44, %v1138_v42  ;;  %v1342_v54 = vmax.f32 %v1334_v48, 0.0 }
 0x3ae   :  { %v1337_v45 = vpop.f32.mrf.mxu0 }
 0x3af   :  { %v1338_v47 = vadd.f32 %v1337_v45, %v1134_v43  ;;  %v1343_v52 = vmax.f32 %v1336_v46, 0.0 }
 0x3b0   :  { %v1339_v49 = vpop.f32.mrf.mxu0 }
 0x3b1   :  { %v1340_v50 = vadd.f32 %v1339_v49, %v1138_v42  ;;  %v1344_v51 = vmax.f32 %v1338_v47, 0.0  ;;  %v4152_v49 = vld [vmem:[#allocation7 + $0x5a4] ss:$8 sps:$4 sm:$0xff]  }
 0x3b3   :  { %v1345_v53 = vmax.f32 %v1340_v50, 0.0  ;;  %v4633_v56 = vpack.c.bf16 %v1344_v51, %v1342_v54  ;;  %v4150_v50 = vld [vmem:[#allocation7 + $0x5a0] ss:$8 sps:$4 sm:$0xff]   ;;  %v4155_v51 = vld [vmem:[#allocation7 + $0x594] ss:$8 sps:$4 sm:$0xff]  }
 0x3b4   :  { %v4156_v54 = vld [vmem:[#allocation7 + $0x580] ss:$8 sps:$4 sm:$0xff]  }
 0x3b5   :  { %v4631_v55 = vpack.c.bf16 %v1345_v53, %v1343_v52  ;;  %v4153_v52 = vld [vmem:[#allocation7 + $0x590] ss:$8 sps:$4 sm:$0xff]   ;;  %v4158_v53 = vld [vmem:[#allocation7 + $0x584] ss:$8 sps:$4 sm:$0xff]  }
 0x3b7   :  { %1581 = vmatprep.mubr.bf16.mxu1 %v4631_v55 }
 0x3b8   :  { %1582 = vmatmul.mubr.bf16.vlgmr.msra.gmra.mxu1 %v4633_v56 }
 0x3b9   :  { %2050 = vmatpush1.bf16.msra.mxu1 %v4111_v4 }
 0x3ba   :  { %2051 = vmatprep.subr.bf16.mxu1 %v4116_v6 }
 0x3bd   :  { %2052 = vmatpush1.bf16.msra.mxu1 %v4114_v7 }
 0x3be   :  { %2053 = vmatprep.subr.bf16.mxu1 %v4119_v8 }
 0x3c1   :  { %2054 = vmatpush1.bf16.msra.mxu1 %v4117_v9 }
 0x3c2   :  { %2055 = vmatprep.subr.bf16.mxu1 %v4122_v10 }
 0x3c5   :  { %2056 = vmatpush1.bf16.msra.mxu1 %v4120_v11 }
 0x3c6   :  { %2057 = vmatprep.subr.bf16.mxu1 %v4125_v12 }
 0x3c9   :  { %2058 = vmatpush1.bf16.msra.mxu1 %v4123_v13 }
 0x3ca   :  { %2059 = vmatprep.subr.bf16.mxu1 %v4128_v16 }
 0x3cd   :  { %2060 = vmatpush1.bf16.msra.mxu1 %v4126_v17  ;;  %v4159_v17 = vld [vmem:[#allocation8 + $0x170] ss:$8 sps:$4 sm:$0xff]  }
 0x3ce   :  { %2061 = vmatprep.subr.bf16.mxu1 %v4131_v18 }
 0x3d1   :  { %2062 = vmatpush1.bf16.msra.mxu1 %v4129_v19  ;;  %v4164_v19 = vld [vmem:[#allocation8 + $0x164] ss:$8 sps:$4 sm:$0xff]  }
 0x3d2   :  { %2063 = vmatprep.subr.bf16.mxu1 %v4134_v20  ;;  %v4162_v20 = vld [vmem:[#allocation8 + $0x160] ss:$8 sps:$4 sm:$0xff]  }
 0x3d5   :  { %2064 = vmatpush1.bf16.msra.mxu1 %v4132_v21  ;;  %v4260_v21 = vld [vmem:[#allocation7 + $0x664] ss:$8 sps:$4 sm:$0xff]  }
 0x3d6   :  { %2065 = vmatprep.subr.bf16.mxu1 %v4137_v22  ;;  %v4167_v22 = vld [vmem:[#allocation8 + $0x154] ss:$8 sps:$4 sm:$0xff]  }
 0x3d9   :  { %2066 = vmatpush2.bf16.msra.mxu1 %v4135_v23  ;;  %v4258_v23 = vld [vmem:[#allocation7 + $0x660] ss:$8 sps:$4 sm:$0xff]  }
 0x3da   :  { %2067 = vmatprep.subr.bf16.mxu1 %v4140_v24  ;;  %v4263_v24 = vld [vmem:[#allocation7 + $0x654] ss:$8 sps:$4 sm:$0xff]  }
 0x3dd   :  { %2068 = vmatpush2.bf16.msra.mxu1 %v4138_v25  ;;  %v4165_v25 = vld [vmem:[#allocation8 + $0x150] ss:$8 sps:$4 sm:$0xff]  }
 0x3de   :  { %2069 = vmatprep.subr.bf16.mxu1 %v4143_v26  ;;  %v4170_v26 = vld [vmem:[#allocation8 + $0x144] ss:$8 sps:$4 sm:$0xff]  }
 0x3e1   :  { %2070 = vmatpush2.bf16.msra.mxu1 %v4141_v27  ;;  %v4261_v27 = vld [vmem:[#allocation7 + $0x650] ss:$8 sps:$4 sm:$0xff]  }
 0x3e2   :  { %2071 = vmatprep.subr.bf16.mxu1 %v4146_v28  ;;  %v4266_v28 = vld [vmem:[#allocation7 + $0x644] ss:$8 sps:$4 sm:$0xff]  }
 0x3e5   :  { %2072 = vmatpush2.bf16.msra.mxu1 %v4144_v29  ;;  %v4168_v29 = vld [vmem:[#allocation8 + $0x140] ss:$8 sps:$4 sm:$0xff]  }
 0x3e6   :  { %2073 = vmatprep.subr.bf16.mxu1 %v4149_v30  ;;  %v4264_v30 = vld [vmem:[#allocation7 + $0x640] ss:$8 sps:$4 sm:$0xff]  }
 0x3e9   :  { %2074 = vmatpush2.bf16.msra.mxu1 %v4147_v31  ;;  %v4269_v31 = vld [vmem:[#allocation7 + $0x634] ss:$8 sps:$4 sm:$0xff]  }
 0x3ea   :  { %2075 = vmatprep.subr.bf16.mxu1 %v4152_v49  ;;  %v4188_v49 = vld [vmem:[#allocation8 + $0x1e4] ss:$8 sps:$4 sm:$0xff]  }
 0x3ed   :  { %2076 = vmatpush2.bf16.msra.mxu1 %v4150_v50  ;;  %v4279_v50 = vld [vmem:[#allocation7 + $0x6f0] ss:$8 sps:$4 sm:$0xff]  }
 0x3ee   :  { %2077 = vmatprep.subr.bf16.mxu1 %v4155_v51  ;;  %v4284_v51 = vld [vmem:[#allocation7 + $0x6e4] ss:$8 sps:$4 sm:$0xff]  }
 0x3f1   :  { %2078 = vmatpush2.bf16.msra.mxu1 %v4153_v52  ;;  %v4186_v52 = vld [vmem:[#allocation8 + $0x1e0] ss:$8 sps:$4 sm:$0xff]  }
 0x3f2   :  { %2079 = vmatprep.subr.bf16.mxu1 %v4158_v53  ;;  %v4191_v53 = vld [vmem:[#allocation8 + $0x1d4] ss:$8 sps:$4 sm:$0xff]  }
 0x3f5   :  { %2080 = vmatpush2.bf16.msra.mxu1 %v4156_v54  ;;  %v4282_v54 = vld [vmem:[#allocation7 + $0x6e0] ss:$8 sps:$4 sm:$0xff]  }
 0x3f6   :  { %2573 = vmatprep.subr.bf16.mxu1 %v4161_v57  ;;  %v4287_v57 = vld [vmem:[#allocation7 + $0x6d4] ss:$8 sps:$4 sm:$0xff]  }
 0x478   :  { %v1583_v33 = vpop.f32.mrf.mxu1 }
 0x479   :  { %v1584_v40 = vadd.f32 %v1583_v33, %v1384_v35  ;;  %v4176_v33 = vld [vmem:[#allocation8 + $0x124] ss:$8 sps:$4 sm:$0xff]  }
 0x47a   :  { %v1585_v36 = vpop.f32.mrf.mxu1 }
 0x47b   :  { %v1586_v38 = vadd.f32 %v1585_v36, %v1388_v34  ;;  %v1592_v46 = vmax.f32 %v1584_v40, 0.0  ;;  %v4174_v36 = vld [vmem:[#allocation8 + $0x120] ss:$8 sps:$4 sm:$0xff]   ;;  %v4177_v40 = vld [vmem:[#allocation8 + $0x110] ss:$8 sps:$4 sm:$0xff]  }
 0x47c   :  { %v1587_v37 = vpop.f32.mrf.mxu1 }
 0x47d   :  { %v1588_v39 = vadd.f32 %v1587_v37, %v1384_v35  ;;  %v1593_v44 = vmax.f32 %v1586_v38, 0.0  ;;  %v4272_v35 = vld [vmem:[#allocation7 + $0x624] ss:$8 sps:$4 sm:$0xff]   ;;  %v4179_v37 = vld [vmem:[#allocation8 + $0x114] ss:$8 sps:$4 sm:$0xff]  }
 0x47e   :  { %v1589_v41 = vpop.f32.mrf.mxu1  ;;  %v4270_v38 = vld [vmem:[#allocation7 + $0x620] ss:$8 sps:$4 sm:$0xff]  }
 0x47f   :  { %v1590_v42 = vadd.f32 %v1589_v41, %v1388_v34  ;;  %v1594_v43 = vmax.f32 %v1588_v39, 0.0  ;;  %v4267_v34 = vld [vmem:[#allocation7 + $0x630] ss:$8 sps:$4 sm:$0xff]   ;;  %v4275_v39 = vld [vmem:[#allocation7 + $0x614] ss:$8 sps:$4 sm:$0xff]  }
 0x480   :  { %v4182_v41 = vld [vmem:[#allocation8 + $0x104] ss:$8 sps:$4 sm:$0xff]  }
 0x481   :  { %v1595_v45 = vmax.f32 %v1590_v42, 0.0  ;;  %v1596_v48 = vpack.c.bf16 %v1594_v43, %v1592_v46  ;;  %v4273_v42 = vld [vmem:[#allocation7 + $0x610] ss:$8 sps:$4 sm:$0xff]   ;;  %v4278_v43 = vld [vmem:[#allocation7 + $0x604] ss:$8 sps:$4 sm:$0xff]  }
 0x482   :  { %v4276_v46 = vld [vmem:[#allocation7 + $0x600] ss:$8 sps:$4 sm:$0xff]  }
 0x483   :  { %v1597_v47 = vpack.c.bf16 %v1595_v45, %v1593_v44  ;;  %v4180_v44 = vld [vmem:[#allocation8 + $0x100] ss:$8 sps:$4 sm:$0xff]   ;;  %v4185_v45 = vld [vmem:[#allocation8 + $0x1f4] ss:$8 sps:$4 sm:$0xff]  }
 0x485   :  { %1831 = vmatprep.mubr.bf16.mxu0 %v1597_v47  ;;  %v4281_v47 = vld [vmem:[#allocation7 + $0x6f4] ss:$8 sps:$4 sm:$0xff]  }
 0x486   :  { %1832 = vmatmul.mubr.bf16.vlgmr.msra.gmra.mxu0 %v1596_v48  ;;  %v4183_v48 = vld [vmem:[#allocation8 + $0x1f0] ss:$8 sps:$4 sm:$0xff]  }
 0x487   :  { %2300 = vmatpush1.bf16.msra.mxu0 %v4255_v1  ;;  %v4207_v1 = vld [vmem:[#allocation8 + $0x270] ss:$8 sps:$4 sm:$0xff]  }
 0x488   :  { %2301 = vmatprep.subr.bf16.mxu0 %v4260_v21  ;;  %v4210_v21 = vld [vmem:[#allocation8 + $0x260] ss:$8 sps:$4 sm:$0xff]  }
 0x48b   :  { %2302 = vmatpush1.bf16.msra.mxu0 %v4258_v23  ;;  %v4215_v23 = vld [vmem:[#allocation8 + $0x254] ss:$8 sps:$4 sm:$0xff]  }
 0x48c   :  { %2303 = vmatprep.subr.bf16.mxu0 %v4263_v24  ;;  %v4299_v24 = vld [vmem:[#allocation7 + $0x694] ss:$8 sps:$4 sm:$0xff]  }
 0x48f   :  { %2304 = vmatpush1.bf16.msra.mxu0 %v4261_v27  ;;  %v4218_v27 = vld [vmem:[#allocation8 + $0x244] ss:$8 sps:$4 sm:$0xff]  }
 0x490   :  { %2305 = vmatprep.subr.bf16.mxu0 %v4266_v28  ;;  %v4302_v28 = vld [vmem:[#allocation7 + $0x684] ss:$8 sps:$4 sm:$0xff]  }
 0x493   :  { %2306 = vmatpush1.bf16.msra.mxu0 %v4264_v30  ;;  %v4219_v30 = vld [vmem:[#allocation8 + $0x230] ss:$8 sps:$4 sm:$0xff]  }
 0x494   :  { %2307 = vmatprep.subr.bf16.mxu0 %v4269_v31  ;;  %v4224_v31 = vld [vmem:[#allocation8 + $0x224] ss:$8 sps:$4 sm:$0xff]  }
 0x497   :  { %2308 = vmatpush1.bf16.msra.mxu0 %v4267_v34  ;;  %v4225_v34 = vld [vmem:[#allocation8 + $0x210] ss:$8 sps:$4 sm:$0xff]  }
 0x498   :  { %2309 = vmatprep.subr.bf16.mxu0 %v4272_v35  ;;  %v4230_v35 = vld [vmem:[#allocation8 + $0x204] ss:$8 sps:$4 sm:$0xff]  }
 0x49b   :  { %2310 = vmatpush1.bf16.msra.mxu0 %v4270_v38  ;;  %v4231_v38 = vld [vmem:[#allocation8 + $0x2f0] ss:$8 sps:$4 sm:$0xff]  }
 0x49c   :  { %2311 = vmatprep.subr.bf16.mxu0 %v4275_v39  ;;  %v4236_v39 = vld [vmem:[#allocation8 + $0x2e4] ss:$8 sps:$4 sm:$0xff]  }
 0x49f   :  { %2312 = vmatpush1.bf16.msra.mxu0 %v4273_v42  ;;  %v4237_v42 = vld [vmem:[#allocation8 + $0x2d0] ss:$8 sps:$4 sm:$0xff]  }
 0x4a0   :  { %2313 = vmatprep.subr.bf16.mxu0 %v4278_v43  ;;  %v4242_v43 = vld [vmem:[#allocation8 + $0x2c4] ss:$8 sps:$4 sm:$0xff]  }
 0x4a3   :  { %2314 = vmatpush1.bf16.msra.mxu0 %v4276_v46  ;;  %v4243_v46 = vld [vmem:[#allocation8 + $0x2b0] ss:$8 sps:$4 sm:$0xff]  }
 0x4a4   :  { %2315 = vmatprep.subr.bf16.mxu0 %v4281_v47  ;;  %v4248_v47 = vld [vmem:[#allocation8 + $0x2a4] ss:$8 sps:$4 sm:$0xff]  }
 0x4a7   :  { %2316 = vmatpush2.bf16.msra.mxu0 %v4279_v50  ;;  %v4249_v50 = vld [vmem:[#allocation8 + $0x290] ss:$8 sps:$4 sm:$0xff]  }
 0x4a8   :  { %2317 = vmatprep.subr.bf16.mxu0 %v4284_v51  ;;  %v4254_v51 = vld [vmem:[#allocation8 + $0x284] ss:$8 sps:$4 sm:$0xff]  }
 0x4ab   :  { %2318 = vmatpush2.bf16.msra.mxu0 %v4282_v54 }
 0x4ac   :  { %2319 = vmatprep.subr.bf16.mxu0 %v4287_v57  ;;  %v4654_v57 = vld [vmem:[#allocation10 + $0x8] sm:$0xff] }
 0x546   :  { %v1833_v60 = vpop.f32.mrf.mxu0 }
 0x547   :  { %v1834_v7 = vadd.f32 %v1833_v60, %v1634_v62  ;;  %v4194_v60 = vld [vmem:[#allocation8 + $0x1c4] ss:$8 sps:$4 sm:$0xff]  }
 0x548   :  { %v1835_v3 = vpop.f32.mrf.mxu0 }
 0x549   :  { %v1836_v5 = vadd.f32 %v1835_v3, %v1638_v61  ;;  %v1842_v13 = vmax.f32 %v1834_v7, 0.0  ;;  %v4192_v3 = vld [vmem:[#allocation8 + $0x1c0] ss:$8 sps:$4 sm:$0xff]   ;;  %v4195_v7 = vld [vmem:[#allocation8 + $0x1b0] ss:$8 sps:$4 sm:$0xff]  }
 0x54a   :  { %v1837_v4 = vpop.f32.mrf.mxu0 }
 0x54b   :  { %v1838_v6 = vadd.f32 %v1837_v4, %v1634_v62  ;;  %v1843_v11 = vmax.f32 %v1836_v5, 0.0  ;;  %v4290_v62 = vld [vmem:[#allocation7 + $0x6c4] ss:$8 sps:$4 sm:$0xff]   ;;  %v4197_v4 = vld [vmem:[#allocation8 + $0x1b4] ss:$8 sps:$4 sm:$0xff]  }
 0x54c   :  { %v1839_v8 = vpop.f32.mrf.mxu0  ;;  %v4288_v5 = vld [vmem:[#allocation7 + $0x6c0] ss:$8 sps:$4 sm:$0xff]  }
 0x54d   :  { %v1840_v9 = vadd.f32 %v1839_v8, %v1638_v61  ;;  %v1844_v10 = vmax.f32 %v1838_v6, 0.0  ;;  %v4285_v61 = vld [vmem:[#allocation7 + $0x6d0] ss:$8 sps:$4 sm:$0xff]   ;;  %v4293_v6 = vld [vmem:[#allocation7 + $0x6b4] ss:$8 sps:$4 sm:$0xff]  }
 0x54e   :  { %2320 = vmatpush2.bf16.msra.mxu0 %v4285_v61  ;;  %v4200_v8 = vld [vmem:[#allocation8 + $0x1a4] ss:$8 sps:$4 sm:$0xff]  }
 0x54f   :  { %v1845_v12 = vmax.f32 %v1840_v9, 0.0  ;;  %v4645_v18 = vpack.c.bf16 %v1844_v10, %v1842_v13  ;;  %2321 = vmatprep.subr.bf16.mxu0 %v4290_v62  ;;  %v4291_v9 = vld [vmem:[#allocation7 + $0x6b0] ss:$8 sps:$4 sm:$0xff]   ;;  %v4198_v10 = vld [vmem:[#allocation8 + $0x1a0] ss:$8 sps:$4 sm:$0xff]  }
 0x550   :  { %v4206_v13 = vld [vmem:[#allocation8 + $0x184] ss:$8 sps:$4 sm:$0xff]  }
 0x551   :  { %v4643_v16 = vpack.c.bf16 %v1845_v12, %v1843_v11  ;;  %v4203_v11 = vld [vmem:[#allocation8 + $0x194] ss:$8 sps:$4 sm:$0xff]   ;;  %v4201_v12 = vld [vmem:[#allocation8 + $0x190] ss:$8 sps:$4 sm:$0xff]  }
 0x552   :  { %2322 = vmatpush2.bf16.msra.mxu0 %v4288_v5 }
 0x553   :  { %2081 = vmatprep.mubr.bf16.mxu1 %v4643_v16  ;;  %2323 = vmatprep.subr.bf16.mxu0 %v4293_v6 }
 0x554   :  { %2082 = vmatmul.mubr.bf16.vlgmr.msra.gmra.mxu1 %v4645_v18 }
 0x555   :  { %2574 = vmatpush1.bf16.msra.mxu1 %v4159_v17  ;;  %2605 = vmatprep.mubr.bf16.mxu1 %v4631_v55  ;;  %v4173_v55 = vld [vmem:[#allocation8 + $0x134] ss:$8 sps:$4 sm:$0xff]   ;;  %v4204_v17 = vld [vmem:[#allocation8 + $0x180] ss:$8 sps:$4 sm:$0xff]  }
 0x556   :  { %2575 = vmatprep.subr.bf16.mxu1 %v4164_v19  ;;  %2324 = vmatpush2.bf16.msra.mxu0 %v4291_v9  ;;  %v4209_v19 = vld [vmem:[#allocation8 + $0x274] ss:$8 sps:$4 sm:$0xff]  }
 0x559   :  { %2576 = vmatpush1.bf16.msra.mxu1 %v4162_v20  ;;  %v4296_v20 = vld [vmem:[#allocation7 + $0x6a4] ss:$8 sps:$4 sm:$0xff]  }
 0x55a   :  { %2577 = vmatprep.subr.bf16.mxu1 %v4167_v22  ;;  %v4294_v22 = vld [vmem:[#allocation7 + $0x6a0] ss:$8 sps:$4 sm:$0xff]   ;;  %2325 = vmatprep.subr.bf16.mxu0 %v4296_v20  ;;  %v4309_v20 = vld [vmem:[#allocation8 + $0x50] ss:$8 sps:$4 sm:$0xff]  }
 0x55b   :  { %2326 = vmatpush2.bf16.msra.mxu0 %v4294_v22  ;;  %v4312_v22 = vld [vmem:[#allocation8 + $0x40] ss:$8 sps:$4 sm:$0xff]  }
 0x55c   :  { %2327 = vmatprep.subr.bf16.mxu0 %v4299_v24  ;;  %v4315_v24 = vld [vmem:[#allocation8 + $0x30] ss:$8 sps:$4 sm:$0xff]  }
 0x55d   :  { %2578 = vmatpush1.bf16.msra.mxu1 %v4165_v25  ;;  %v4213_v25 = vld [vmem:[#allocation8 + $0x250] ss:$8 sps:$4 sm:$0xff]  }
 0x55e   :  { %2579 = vmatprep.subr.bf16.mxu1 %v4170_v26  ;;  %v4297_v26 = vld [vmem:[#allocation7 + $0x690] ss:$8 sps:$4 sm:$0xff]  }
 0x55f   :  { %2328 = vmatpush2.bf16.msra.mxu0 %v4297_v26  ;;  %v4318_v26 = vld [vmem:[#allocation8 + $0x20] ss:$8 sps:$4 sm:$0xff]  }
 0x560   :  { %2329 = vmatprep.subr.bf16.mxu0 %v4302_v28  ;;  %v4326_v28 = vld [vmem:[#allocation8 + $0x4] ss:$8 sps:$4 sm:$0xff]  }
 0x561   :  { %2580 = vmatpush1.bf16.msra.mxu1 %v4168_v29  ;;  %v4300_v29 = vld [vmem:[#allocation7 + $0x680] ss:$8 sps:$4 sm:$0xff]  }
 0x562   :  { %2581 = vmatprep.subr.bf16.mxu1 %v4173_v55  ;;  %v4305_v55 = vld [vmem:[#allocation8 + $0x74] ss:$8 sps:$4 sm:$0xff]  }
 0x563   :  { %2330 = vmatpush2.bf16.msra.mxu0 %v4300_v29  ;;  %v4329_v29 = vld [vmem:[#allocation8 + $0xf4] ss:$8 sps:$4 sm:$0xff]  }
 0x564   :  { %2776 = vmatprep.subr.bf16.mxu0 %v4305_v55  ;;  %v4332_v55 = vld [vmem:[#allocation8 + $0xe4] ss:$8 sps:$4 sm:$0xff]  }
 0x565   :  { %2582 = vmatpush1.bf16.msra.mxu1 %v4171_v32  ;;  %v4222_v32 = vld [vmem:[#allocation8 + $0x220] ss:$8 sps:$4 sm:$0xff]  }
 0x566   :  { %2583 = vmatprep.subr.bf16.mxu1 %v4176_v33  ;;  %v4227_v33 = vld [vmem:[#allocation8 + $0x214] ss:$8 sps:$4 sm:$0xff]  }
 0x569   :  { %2584 = vmatpush1.bf16.msra.mxu1 %v4174_v36  ;;  %v4228_v36 = vld [vmem:[#allocation8 + $0x200] ss:$8 sps:$4 sm:$0xff]  }
 0x56a   :  { %2585 = vmatprep.subr.bf16.mxu1 %v4179_v37  ;;  %v4233_v37 = vld [vmem:[#allocation8 + $0x2f4] ss:$8 sps:$4 sm:$0xff]  }
 0x56d   :  { %2586 = vmatpush1.bf16.msra.mxu1 %v4177_v40  ;;  %v4234_v40 = vld [vmem:[#allocation8 + $0x2e0] ss:$8 sps:$4 sm:$0xff]  }
 0x56e   :  { %2587 = vmatprep.subr.bf16.mxu1 %v4182_v41  ;;  %v4239_v41 = vld [vmem:[#allocation8 + $0x2d4] ss:$8 sps:$4 sm:$0xff]  }
 0x571   :  { %2588 = vmatpush1.bf16.msra.mxu1 %v4180_v44  ;;  %v4240_v44 = vld [vmem:[#allocation8 + $0x2c0] ss:$8 sps:$4 sm:$0xff]  }
 0x572   :  { %2589 = vmatprep.subr.bf16.mxu1 %v4185_v45  ;;  %v4245_v45 = vld [vmem:[#allocation8 + $0x2b4] ss:$8 sps:$4 sm:$0xff]  }
 0x575   :  { %2590 = vmatpush2.bf16.msra.mxu1 %v4183_v48  ;;  %v4246_v48 = vld [vmem:[#allocation8 + $0x2a0] ss:$8 sps:$4 sm:$0xff]  }
 0x576   :  { %2591 = vmatprep.subr.bf16.mxu1 %v4188_v49  ;;  %v4251_v49 = vld [vmem:[#allocation8 + $0x294] ss:$8 sps:$4 sm:$0xff]  }
 0x579   :  { %2592 = vmatpush2.bf16.msra.mxu1 %v4186_v52  ;;  %v4252_v52 = vld [vmem:[#allocation8 + $0x280] ss:$8 sps:$4 sm:$0xff]  }
 0x57a   :  { %2593 = vmatprep.subr.bf16.mxu1 %v4191_v53  ;;  %v1883_v53 = vsub.s32 6, %v4599_v63 }
 0x57d   :  { %2594 = vmatpush2.bf16.msra.mxu1 %v4189_v58  ;;  %v1888_v58 = vrot.slane %v4654_v57, %v1883_v53 }
 0x57e   :  { %2595 = vmatprep.subr.bf16.mxu1 %v4194_v60  ;;  %v4657_v60 = vld [vmem:[#allocation10] sm:$0xff] }
 0x57f   :  { %v1884_v61 = vrot.slane %v4657_v60, %v1883_v53  ;;  %v4368_v53 = vld [vmem:[#allocation8 + $0x324] ss:$8 sps:$4 sm:$0xff]  }
 0x581   :  { %2596 = vmatpush2.bf16.msra.mxu1 %v4192_v3 }
 0x582   :  { %2597 = vmatprep.subr.bf16.mxu1 %v4197_v4 }
 0x585   :  { %2598 = vmatpush2.bf16.msra.mxu1 %v4195_v7 }
 0x586   :  { %2599 = vmatprep.subr.bf16.mxu1 %v4200_v8 }
 0x589   :  { %2600 = vmatpush2.bf16.msra.mxu1 %v4198_v10 }
 0x58a   :  { %2601 = vmatprep.subr.bf16.mxu1 %v4203_v11 }
 0x58d   :  { %2602 = vmatpush2.bf16.msra.mxu1 %v4201_v12 }
 0x58e   :  { %2603 = vmatprep.subr.bf16.mxu1 %v4206_v13  ;;  %v4303_v13 = vld [vmem:[#allocation8 + $0x70] ss:$8 sps:$4 sm:$0xff]  }
 0x591   :  { %2604 = vmatpush2.bf16.msra.mxu1 %v4204_v17 }
 0x592   :  { %3012 = vmatprep.subr.bf16.mxu1 %v4209_v19  ;;  %v4308_v19 = vld [vmem:[#allocation8 + $0x64] ss:$8 sps:$4 sm:$0xff]  }
 0x594   :  { %2606 = vmatmul.mubr.bf16.vlgmr.msra.gmra.mxu1 %v4633_v56  ;;  %v4216_v56 = vld [vmem:[#allocation8 + $0x240] ss:$8 sps:$4 sm:$0xff]  }
 0x595   :  { %3013 = vmatpush1.bf16.msra.mxu1 %v4207_v1  ;;  %3044 = vmatprep.mubr.bf16.mxu1 %v4643_v16  ;;  %v4221_v16 = vld [vmem:[#allocation8 + $0x234] ss:$8 sps:$4 sm:$0xff]   ;;  %v4306_v1 = vld [vmem:[#allocation8 + $0x60] ss:$8 sps:$4 sm:$0xff]  }
 0x596   :  { %3014 = vmatprep.subr.bf16.mxu1 %v4212_v2  ;;  %v4311_v2 = vld [vmem:[#allocation8 + $0x54] ss:$8 sps:$4 sm:$0xff]  }
 0x599   :  { %3015 = vmatpush1.bf16.msra.mxu1 %v4210_v21  ;;  %v4314_v21 = vld [vmem:[#allocation8 + $0x44] ss:$8 sps:$4 sm:$0xff]  }
 0x59a   :  { %3016 = vmatprep.subr.bf16.mxu1 %v4215_v23  ;;  %v4317_v23 = vld [vmem:[#allocation8 + $0x34] ss:$8 sps:$4 sm:$0xff]  }
 0x59d   :  { %3017 = vmatpush1.bf16.msra.mxu1 %v4213_v25  ;;  %v4320_v25 = vld [vmem:[#allocation8 + $0x24] ss:$8 sps:$4 sm:$0xff]  }
 0x59e   :  { %3018 = vmatprep.subr.bf16.mxu1 %v4218_v27  ;;  %v4323_v27 = vld [vmem:[#allocation8 + $0x14] ss:$8 sps:$4 sm:$0xff]  }
 0x5a1   :  { %3019 = vmatpush1.bf16.msra.mxu1 %v4216_v56  ;;  %v4324_v56 = vld [vmem:[#allocation8] ss:$8 sps:$4 sm:$0xff]  }
 0x5a2   :  { %3020 = vmatprep.subr.bf16.mxu1 %v4221_v16  ;;  %v4327_v16 = vld [vmem:[#allocation8 + $0xf0] ss:$8 sps:$4 sm:$0xff]  }
 0x5a5   :  { %3021 = vmatpush1.bf16.msra.mxu1 %v4219_v30  ;;  %v4330_v30 = vld [vmem:[#allocation8 + $0xe0] ss:$8 sps:$4 sm:$0xff]  }
 0x5a6   :  { %3022 = vmatprep.subr.bf16.mxu1 %v4224_v31  ;;  %v4335_v31 = vld [vmem:[#allocation8 + $0xd4] ss:$8 sps:$4 sm:$0xff]  }
 0x5a9   :  { %3023 = vmatpush1.bf16.msra.mxu1 %v4222_v32  ;;  %v4333_v32 = vld [vmem:[#allocation8 + $0xd0] ss:$8 sps:$4 sm:$0xff]  }
 0x5aa   :  { %3024 = vmatprep.subr.bf16.mxu1 %v4227_v33  ;;  %v4338_v33 = vld [vmem:[#allocation8 + $0xc4] ss:$8 sps:$4 sm:$0xff]  }
 0x5ad   :  { %3025 = vmatpush1.bf16.msra.mxu1 %v4225_v34  ;;  %v4336_v34 = vld [vmem:[#allocation8 + $0xc0] ss:$8 sps:$4 sm:$0xff]  }
 0x5ae   :  { %3026 = vmatprep.subr.bf16.mxu1 %v4230_v35  ;;  %v4341_v35 = vld [vmem:[#allocation8 + $0xb4] ss:$8 sps:$4 sm:$0xff]  }
 0x5b1   :  { %3027 = vmatpush1.bf16.msra.mxu1 %v4228_v36  ;;  %v4339_v36 = vld [vmem:[#allocation8 + $0xb0] ss:$8 sps:$4 sm:$0xff]  }
 0x5b2   :  { %3028 = vmatprep.subr.bf16.mxu1 %v4233_v37  ;;  %v4344_v37 = vld [vmem:[#allocation8 + $0xa4] ss:$8 sps:$4 sm:$0xff]  }
 0x5b5   :  { %3029 = vmatpush2.bf16.msra.mxu1 %v4231_v38  ;;  %v4342_v38 = vld [vmem:[#allocation8 + $0xa0] ss:$8 sps:$4 sm:$0xff]  }
 0x5b6   :  { %3030 = vmatprep.subr.bf16.mxu1 %v4236_v39  ;;  %v4347_v39 = vld [vmem:[#allocation8 + $0x94] ss:$8 sps:$4 sm:$0xff]  }
 0x5b9   :  { %3031 = vmatpush2.bf16.msra.mxu1 %v4234_v40  ;;  %v4345_v40 = vld [vmem:[#allocation8 + $0x90] ss:$8 sps:$4 sm:$0xff]  }
 0x5ba   :  { %3032 = vmatprep.subr.bf16.mxu1 %v4239_v41  ;;  %v4350_v41 = vld [vmem:[#allocation8 + $0x84] ss:$8 sps:$4 sm:$0xff]  }
 0x5bd   :  { %3033 = vmatpush2.bf16.msra.mxu1 %v4237_v42  ;;  %v4348_v42 = vld [vmem:[#allocation8 + $0x80] ss:$8 sps:$4 sm:$0xff]  }
 0x5be   :  { %3034 = vmatprep.subr.bf16.mxu1 %v4242_v43  ;;  %v4353_v43 = vld [vmem:[#allocation8 + $0x374] ss:$8 sps:$4 sm:$0xff]  }
 0x5c1   :  { %3035 = vmatpush2.bf16.msra.mxu1 %v4240_v44  ;;  %v4351_v44 = vld [vmem:[#allocation8 + $0x370] ss:$8 sps:$4 sm:$0xff]  }
 0x5c2   :  { %3036 = vmatprep.subr.bf16.mxu1 %v4245_v45  ;;  %v4356_v45 = vld [vmem:[#allocation8 + $0x364] ss:$8 sps:$4 sm:$0xff]  }
 0x5c5   :  { %3037 = vmatpush2.bf16.msra.mxu1 %v4243_v46  ;;  %v4354_v46 = vld [vmem:[#allocation8 + $0x360] ss:$8 sps:$4 sm:$0xff]  }
 0x5c6   :  { %3038 = vmatprep.subr.bf16.mxu1 %v4248_v47  ;;  %v4359_v47 = vld [vmem:[#allocation8 + $0x354] ss:$8 sps:$4 sm:$0xff]  }
 0x5c9   :  { %3039 = vmatpush2.bf16.msra.mxu1 %v4246_v48  ;;  %v4357_v48 = vld [vmem:[#allocation8 + $0x350] ss:$8 sps:$4 sm:$0xff]  }
 0x5ca   :  { %3040 = vmatprep.subr.bf16.mxu1 %v4251_v49  ;;  %v4362_v49 = vld [vmem:[#allocation8 + $0x344] ss:$8 sps:$4 sm:$0xff]  }
 0x5cd   :  { %3041 = vmatpush2.bf16.msra.mxu1 %v4249_v50  ;;  %v4360_v50 = vld [vmem:[#allocation8 + $0x340] ss:$8 sps:$4 sm:$0xff]  }
 0x5ce   :  { %3042 = vmatprep.subr.bf16.mxu1 %v4254_v51  ;;  %v4365_v51 = vld [vmem:[#allocation8 + $0x334] ss:$8 sps:$4 sm:$0xff]  }
 0x5d1   :  { %3043 = vmatpush2.bf16.msra.mxu1 %v4252_v52  ;;  %v4363_v52 = vld [vmem:[#allocation8 + $0x330] ss:$8 sps:$4 sm:$0xff]  }
 0x5d4   :  { %3045 = vmatmul.mubr.bf16.vlgmr.msra.gmra.mxu1 %v4645_v18 }
 0x614   :  { %v2083_v54 = vpop.f32.mrf.mxu1 }
 0x615   :  { %v2084_v6 = vadd.f32 %v2083_v54, %v1884_v61  ;;  %v4366_v54 = vld [vmem:[#allocation8 + $0x320] ss:$8 sps:$4 sm:$0xff]  }
 0x616   :  { %v2085_v62 = vpop.f32.mrf.mxu1 }
 0x617   :  { %v2086_v4 = vadd.f32 %v2085_v62, %v1888_v58  ;;  %v2092_v11 = vmax.f32 %v2084_v6, 0.0  ;;  %v4372_v62 = vld [vmem:[#allocation8 + $0x300] ss:$8 sps:$4 sm:$0xff]  }
 0x618   :  { %v2087_v3 = vpop.f32.mrf.mxu1  ;;  %v4378_v6 = vld [vmem:[#allocation8 + $0x3e0] ss:$8 sps:$4 sm:$0xff]  }
 0x619   :  { %v2088_v5 = vadd.f32 %v2087_v3, %v1884_v61  ;;  %v2093_v18 = vmax.f32 %v2086_v4, 0.0  ;;  %v4374_v61 = vld [vmem:[#allocation8 + $0x304] ss:$8 sps:$4 sm:$0xff]   ;;  %v4377_v3 = vld [vmem:[#allocation8 + $0x3f4] ss:$8 sps:$4 sm:$0xff]  }
 0x61a   :  { %v2089_v7 = vpop.f32.mrf.mxu1  ;;  %v4375_v4 = vld [vmem:[#allocation8 + $0x3f0] ss:$8 sps:$4 sm:$0xff]  }
 0x61b   :  { %v2090_v8 = vadd.f32 %v2089_v7, %v1888_v58  ;;  %v2094_v9 = vmax.f32 %v2088_v5, 0.0  ;;  %v4369_v58 = vld [vmem:[#allocation8 + $0x310] ss:$8 sps:$4 sm:$0xff]   ;;  %v4380_v5 = vld [vmem:[#allocation8 + $0x3e4] ss:$8 sps:$4 sm:$0xff]  }
 0x61c   :  { %v4383_v7 = vld [vmem:[#allocation8 + $0x3d4] ss:$8 sps:$4 sm:$0xff]  }
 0x61d   :  { %v2095_v10 = vmax.f32 %v2090_v8, 0.0  ;;  %v2096_v17 = vpack.c.bf16 %v2094_v9, %v2092_v11  ;;  %v4381_v8 = vld [vmem:[#allocation8 + $0x3d0] ss:$8 sps:$4 sm:$0xff]   ;;  %v4386_v9 = vld [vmem:[#allocation8 + $0x3c4] ss:$8 sps:$4 sm:$0xff]  }
 0x61e   :  { %v4387_v11 = vld [vmem:[#allocation8 + $0x3b0] ss:$8 sps:$4 sm:$0xff]  }
 0x61f   :  { %v2097_v12 = vpack.c.bf16 %v2095_v10, %v2093_v18  ;;  %v4384_v18 = vld [vmem:[#allocation8 + $0x3c0] ss:$8 sps:$4 sm:$0xff]   ;;  %v4389_v10 = vld [vmem:[#allocation8 + $0x3b4] ss:$8 sps:$4 sm:$0xff]  }
 0x621   :  { %2331 = vmatprep.mubr.bf16.mxu0 %v2097_v12  ;;  %v4392_v12 = vld [vmem:[#allocation8 + $0x3a4] ss:$8 sps:$4 sm:$0xff]  }
 0x622   :  { %2332 = vmatmul.mubr.bf16.vlgmr.msra.gmra.mxu0 %v2096_v17  ;;  %v4395_v17 = vld [vmem:[#allocation8 + $0x394] ss:$8 sps:$4 sm:$0xff]  }
 0x623   :  { %2777 = vmatpush1.bf16.msra.mxu0 %v4303_v13  ;;  %2808 = vmatprep.mubr.bf16.mxu0 %v4619_v14  ;;  %v4321_v14 = vld [vmem:[#allocation8 + $0x10] ss:$8 sps:$4 sm:$0xff]   ;;  %v4390_v13 = vld [vmem:[#allocation8 + $0x3a0] ss:$8 sps:$4 sm:$0xff]  }
 0x624   :  { %2778 = vmatprep.subr.bf16.mxu0 %v4308_v19  ;;  %v4393_v19 = vld [vmem:[#allocation8 + $0x390] ss:$8 sps:$4 sm:$0xff]  }
 0x627   :  { %2779 = vmatpush1.bf16.msra.mxu0 %v4306_v1  ;;  %v4398_v1 = vld [vmem:[#allocation8 + $0x384] ss:$8 sps:$4 sm:$0xff]  }
 0x628   :  { %2780 = vmatprep.subr.bf16.mxu0 %v4311_v2  ;;  %v4396_v2 = vld [vmem:[#allocation8 + $0x380] ss:$8 sps:$4 sm:$0xff]  }
 0x62b   :  { %2781 = vmatpush1.bf16.msra.mxu0 %v4309_v20  ;;  %v2133_v20 = vsub.s32 7, %v4599_v63 }
 0x62c   :  { %2782 = vmatprep.subr.bf16.mxu0 %v4314_v21 }
 0x62f   :  { %2783 = vmatpush1.bf16.msra.mxu0 %v4312_v22  ;;  %v2138_v22 = vrot.slane %v4654_v57, %v2133_v20 }
 0x630   :  { %2784 = vmatprep.subr.bf16.mxu0 %v4317_v23  ;;  %v2134_v23 = vrot.slane %v4657_v60, %v2133_v20 }
 0x633   :  { %2785 = vmatpush1.bf16.msra.mxu0 %v4315_v24 }
 0x634   :  { %2786 = vmatprep.subr.bf16.mxu0 %v4320_v25 }
 0x637   :  { %2787 = vmatpush1.bf16.msra.mxu0 %v4318_v26 }
 0x638   :  { %2788 = vmatprep.subr.bf16.mxu0 %v4323_v27 }
 0x63b   :  { %2789 = vmatpush1.bf16.msra.mxu0 %v4321_v14 }
 0x63c   :  { %2790 = vmatprep.subr.bf16.mxu0 %v4326_v28 }
 0x63f   :  { %2791 = vmatpush1.bf16.msra.mxu0 %v4324_v56 }
 0x640   :  { %2792 = vmatprep.subr.bf16.mxu0 %v4329_v29 }
 0x643   :  { %2793 = vmatpush2.bf16.msra.mxu0 %v4327_v16 }
 0x644   :  { %2794 = vmatprep.subr.bf16.mxu0 %v4332_v55 }
 0x647   :  { %2795 = vmatpush2.bf16.msra.mxu0 %v4330_v30 }
 0x648   :  { %2796 = vmatprep.subr.bf16.mxu0 %v4335_v31 }
 0x64b   :  { %2797 = vmatpush2.bf16.msra.mxu0 %v4333_v32 }
 0x64c   :  { %2798 = vmatprep.subr.bf16.mxu0 %v4338_v33 }
 0x64f   :  { %2799 = vmatpush2.bf16.msra.mxu0 %v4336_v34 }
 0x650   :  { %2800 = vmatprep.subr.bf16.mxu0 %v4341_v35 }
 0x653   :  { %2801 = vmatpush2.bf16.msra.mxu0 %v4339_v36 }
 0x654   :  { %2802 = vmatprep.subr.bf16.mxu0 %v4344_v37  ;;  %v2607_v63 = vpop.f32.mrf.mxu1 }
 0x656   :  { %v2609_v33 = vpop.f32.mrf.mxu1 }
 0x657   :  { %2803 = vmatpush2.bf16.msra.mxu0 %v4342_v38 }
 0x658   :  { %2804 = vmatprep.subr.bf16.mxu0 %v4347_v39  ;;  %v2611_v57 = vpop.f32.mrf.mxu1 }
 0x65a   :  { %v2613_v60 = vpop.f32.mrf.mxu1 }
 0x65b   :  { %2805 = vmatpush2.bf16.msra.mxu0 %v4345_v40  ;;  %v3300_v40 = vld [vmem:[#allocation10 + $0x10] ss:$8 sm:$0x3] }
 0x65c   :  { %2806 = vmatprep.subr.bf16.mxu0 %v4350_v41 }
 0x65f   :  { %2807 = vmatpush2.bf16.msra.mxu0 %v4348_v42 }
 0x660   :  { %3252 = vmatprep.subr.bf16.mxu0 %v4353_v43 }
 0x662   :  { %2809 = vmatmul.mubr.bf16.vlgmr.msra.gmra.mxu0 %v4621_v15  ;;  %v4371_v15 = vld [vmem:[#allocation8 + $0x314] ss:$8 sps:$4 sm:$0xff]  }
 0x663   :  { %3253 = vmatpush1.bf16.msra.mxu0 %v4351_v44 }
 0x664   :  { %3254 = vmatprep.subr.bf16.mxu0 %v4356_v45  ;;  %v3305_v45 = vrot.slane %v3300_v40, %v4602_v0 }
 0x667   :  { %3255 = vmatpush1.bf16.msra.mxu0 %v4354_v46 }
 0x668   :  { %3256 = vmatprep.subr.bf16.mxu0 %v4359_v47 }
 0x66b   :  { %3257 = vmatpush1.bf16.msra.mxu0 %v4357_v48 }
 0x66c   :  { %3258 = vmatprep.subr.bf16.mxu0 %v4362_v49 }
 0x66f   :  { %3259 = vmatpush1.bf16.msra.mxu0 %v4360_v50 }
 0x670   :  { %3260 = vmatprep.subr.bf16.mxu0 %v4365_v51  ;;  %v3309_v51 = vrot.slane %v3300_v40, %v4613_v59 }
 0x673   :  { %3261 = vmatpush1.bf16.msra.mxu0 %v4363_v52 }
 0x674   :  { %3262 = vmatprep.subr.bf16.mxu0 %v4368_v53 }
 0x677   :  { %3263 = vmatpush1.bf16.msra.mxu0 %v4366_v54 }
 0x678   :  { %3264 = vmatprep.subr.bf16.mxu0 %v4371_v15 }
 0x67b   :  { %3265 = vmatpush1.bf16.msra.mxu0 %v4369_v58 }
 0x67c   :  { %3266 = vmatprep.subr.bf16.mxu0 %v4374_v61 }
 0x67f   :  { %3267 = vmatpush1.bf16.msra.mxu0 %v4372_v62 }
 0x680   :  { %3268 = vmatprep.subr.bf16.mxu0 %v4377_v3 }
 0x683   :  { %3269 = vmatpush2.bf16.msra.mxu0 %v4375_v4 }
 0x684   :  { %3270 = vmatprep.subr.bf16.mxu0 %v4380_v5 }
 0x687   :  { %3271 = vmatpush2.bf16.msra.mxu0 %v4378_v6 }
 0x688   :  { %3272 = vmatprep.subr.bf16.mxu0 %v4383_v7 }
 0x68b   :  { %3273 = vmatpush2.bf16.msra.mxu0 %v4381_v8 }
 0x68c   :  { %3274 = vmatprep.subr.bf16.mxu0 %v4386_v9 }
 0x68f   :  { %3275 = vmatpush2.bf16.msra.mxu0 %v4384_v18 }
 0x690   :  { %3276 = vmatprep.subr.bf16.mxu0 %v4389_v10 }
 0x693   :  { %3277 = vmatpush2.bf16.msra.mxu0 %v4387_v11 }
 0x694   :  { %3278 = vmatprep.subr.bf16.mxu0 %v4392_v12  ;;  %v3046_v36 = vpop.f32.mrf.mxu1 }
 0x696   :  { %v3048_v39 = vpop.f32.mrf.mxu1 }
 0x697   :  { %3279 = vmatpush2.bf16.msra.mxu0 %v4390_v13 }
 0x698   :  { %3280 = vmatprep.subr.bf16.mxu0 %v4395_v17  ;;  %v3050_v46 = vpop.f32.mrf.mxu1 }
 0x69a   :  { %v3052_v58 = vpop.f32.mrf.mxu1 }
 0x69b   :  { %3281 = vmatpush2.bf16.msra.mxu0 %v4393_v19 }
 0x69c   :  { %3282 = vmatprep.subr.bf16.mxu0 %v4398_v1 }
 0x69f   :  { %3283 = vmatpush2.bf16.msra.mxu0 %v4396_v2 }
 0x6e2   :  { %v2333_v21 = vpop.f32.mrf.mxu0 }
 0x6e3   :  { %v2334_v14 = vadd.f32 %v2333_v21, %v2134_v23 }
 0x6e4   :  { %v2335_v24 = vpop.f32.mrf.mxu0 }
 0x6e5   :  { %v2336_v26 = vadd.f32 %v2335_v24, %v2138_v22  ;;  %v2342_v30 = vmax.f32 %v2334_v14, 0.0 }
 0x6e6   :  { %v2337_v25 = vpop.f32.mrf.mxu0 }
 0x6e7   :  { %v2338_v27 = vadd.f32 %v2337_v25, %v2134_v23  ;;  %v2343_v16 = vmax.f32 %v2336_v26, 0.0 }
 0x6e8   :  { %v2339_v28 = vpop.f32.mrf.mxu0 }
 0x6e9   :  { %v2340_v56 = vadd.f32 %v2339_v28, %v2138_v22  ;;  %v2344_v29 = vmax.f32 %v2338_v27, 0.0 }
 0x6eb   :  { %v2345_v55 = vmax.f32 %v2340_v56, 0.0  ;;  %v2346_v32 = vpack.c.bf16 %v2344_v29, %v2342_v30 }
 0x6ed   :  { %v2347_v31 = vpack.c.bf16 %v2345_v55, %v2343_v16 }
 0x6ef   :  { %3284 = vmatprep.mubr.bf16.mxu0 %v2347_v31 }
 0x6f0   :  { %3285 = vmatmul.mubr.bf16.vlgmr.msra.gmra.mxu0 %v2346_v32 }
 0x722   :  { %v2810_v34 = vpop.f32.mrf.mxu0 }
 0x723   :  { %v2811_v38 = vadd.f32 %v2810_v34, %v2607_v63 }
 0x724   :  { %v2812_v35 = vpop.f32.mrf.mxu0 }
 0x725   :  { %v2813_v41 = vadd.f32 %v2812_v35, %v2609_v33  ;;  %v3055_v44 = vadd.f32 %v3046_v36, %v2811_v38 }
 0x726   :  { %v2814_v37 = vpop.f32.mrf.mxu0 }
 0x727   :  { %v2815_v43 = vadd.f32 %v2814_v37, %v2611_v57  ;;  %v3056_v50 = vadd.f32 %v3048_v39, %v2813_v41 }
 0x728   :  { %v2816_v42 = vpop.f32.mrf.mxu0 }
 0x729   :  { %v2817_v48 = vadd.f32 %v2816_v42, %v2613_v60  ;;  %v3057_v15 = vadd.f32 %v3050_v46, %v2815_v43 }
 0x72b   :  { %v3058_v4 = vadd.f32 %v3052_v58, %v2817_v48 }
 0x7b0   :  { %v3286_v47 = vpop.f32.mrf.mxu0 }
 0x7b1   :  { %v3295_v49 = vadd.f32 %v3286_v47, %v3055_v44 }
 0x7b2   :  { %v3288_v52 = vpop.f32.mrf.mxu0 }
 0x7b3   :  { %v3312_v53 = vadd.f32 %v3305_v45, %v3295_v49  ;;  %v3296_v54 = vadd.f32 %v3288_v52, %v3056_v50 }
 0x7b4   :  { %v3290_v61 = vpop.f32.mrf.mxu0 }
 0x7b5   :  { %3316 = vst [vmem:[#allocation11] sm:$0xff] %v3312_v53  ;;  %v3313_v62 = vadd.f32 %v3309_v51, %v3296_v54  ;;  %v3297_v3 = vadd.f32 %v3290_v61, %v3057_v15 }
 0x7b6   :  { %v3292_v5 = vpop.f32.mrf.mxu0 }
 0x7b7   :  { %3317 = vst [vmem:[#allocation11 + $0x8] sm:$0xff] %v3313_v62  ;;  %v3314_v0 = vadd.f32 %v3305_v45, %v3297_v3  ;;  %v3298_v6 = vadd.f32 %v3292_v5, %v3058_v4 }
 0x7b9   :  { %3318 = vst [vmem:[#allocation11 + $0x10] sm:$0xff] %v3314_v0  ;;  %v3315_v7 = vadd.f32 %v3309_v51, %v3298_v6 }
 0x7bb   :  { %3319 = vst [vmem:[#allocation11 + $0x18] sm:$0xff] %v3315_v7 }
 0x7bc   :  { %4512 = shalt.err (!%p4509_p1)
}
 0x7bd   :  { %3331 = dma.vmem_to_hbm [thread:$0]  %s3326_s4, 512, %s4678_s5, [#allocation4], %s4534_s7, %s4534_s7, %s4535_s8  }
 0x7be   :  { %4527 = dma.done.wait [#allocation4], 512  }
 0x7bf   :  { %4528 = vsyncadd [#allocation4], 4294966784 }
 0x7c0   :  { %3335 = vsyncpa [#allocation3], 1 }
 0x7c1   :  { %3336 = vsyncpa [#allocation6], 1 }
 0x7c2   :  { %3337 = vsyncpa [#allocation9], 1 }
 0x7c3   :  { %3338 = vsyncpa [#allocation4], 1 }

</bundles_post_ra>
